<compile_context>
chip_gen: v5e
topology: v5e:2x2
jax: 0.10.0
libtpu: 0.0.40
codegen_flags: <defaults>
</compile_context>

<pallas_src>
import functools

import numpy as np
import jax
import jax.numpy as jnp
from jax.experimental import pallas as pl
from jax.experimental.pallas import tpu as pltpu


def _vmem_limit_bytes(block_bytes, headroom=2 << 20, cap=48 << 20):
    """Scoped-VMEM limit sized from the (double-buffered) resident block set."""
    est = 2 * int(sum(block_bytes)) + int(headroom)
    return int(min(max(est, 4 << 20), cap))


# ---------------------------------------------------------------------------
# Kernel 1: per-wavelength pre-scaled propagation-kernel spectrum
#   K_c(y, x) = exp(1j*k_c*r) * z/(1j*lambda_c*r^2)        (never written to HBM)
#   SK_c      = fft2(K_c) * dx*dy/(M*N)   via  F_M @ K_c @ F_N
# (the dx*dy/(M*N) scale is folded into the amp input host-side)
# ---------------------------------------------------------------------------
def _kernel_spectrum_body(wl_ref, r_ref, amp_ref,
                          fm_re_ref, fm_im_ref, fn_re_ref, fn_im_ref,
                          sk_re_ref, sk_im_ref):
    f32 = jnp.float32
    c = pl.program_id(0)
    inv_wl = 1.0 / wl_ref[c]                       # scalar wavelength (SMEM)
    phase = (2.0 * np.pi * inv_wl) * r_ref[...]
    amp = amp_ref[...] * inv_wl                    # z*dx*dy/(M*N) / (lambda*r^2)
    # exp(1j*phase)/1j * amp = amp*sin(phase) - 1j*amp*cos(phase)
    kr = amp * jnp.sin(phase)
    ki = -amp * jnp.cos(phase)

    fmr, fmi = fm_re_ref[...], fm_im_ref[...]
    tr = (jnp.dot(fmr, kr, preferred_element_type=f32)
          - jnp.dot(fmi, ki, preferred_element_type=f32))
    ti = (jnp.dot(fmr, ki, preferred_element_type=f32)
          + jnp.dot(fmi, kr, preferred_element_type=f32))
    fnr, fni = fn_re_ref[...], fn_im_ref[...]
    sk_re_ref[...] = (jnp.dot(tr, fnr, preferred_element_type=f32)
                      - jnp.dot(ti, fni, preferred_element_type=f32))
    sk_im_ref[...] = (jnp.dot(tr, fni, preferred_element_type=f32)
                      + jnp.dot(ti, fnr, preferred_element_type=f32))


def build_kernel_spectrum(wavelengths, r, amp_scaled, fm_re, fm_im, fn_re, fn_im):
    C = wavelengths.shape[0]
    M, N = r.shape

    def full2(a, b):
        return pl.BlockSpec((a, b), lambda c: (0, 0))

    out_spec = pl.BlockSpec((None, M, N), lambda c: (c, 0, 0))
    blk = [M * N * 4, M * N * 4,             # r, amp
           M * M * 4, M * M * 4,             # F_M re/im
           N * N * 4, N * N * 4,             # F_N re/im
           M * N * 4, M * N * 4]             # SK re/im outputs
    return pl.pallas_call(
        _kernel_spectrum_body,
        out_shape=(jax.ShapeDtypeStruct((C, M, N), jnp.float32),
                   jax.ShapeDtypeStruct((C, M, N), jnp.float32)),
        grid_spec=pltpu.PrefetchScalarGridSpec(
            num_scalar_prefetch=0,
            grid=(C,),
            in_specs=[
                pl.BlockSpec(memory_space=pltpu.MemorySpace.SMEM),  # wavelengths
                full2(M, N), full2(M, N),                           # r, scaled z/r^2
                full2(M, M), full2(M, M),                           # F_M re/im
                full2(N, N), full2(N, N),                           # F_N re/im
            ],
            out_specs=[out_spec, out_spec],
        ),
        compiler_params=pltpu.CompilerParams(
            dimension_semantics=("parallel",),
            vmem_limit_bytes=_vmem_limit_bytes(blk)),
    )(wavelengths, r, amp_scaled, fm_re, fm_im, fn_re, fn_im)


# ---------------------------------------------------------------------------
# Kernel 2: all B*C slices lane-packed, single invocation.
#   Y = G_M @ ((F_M[:,:H] @ U_slab @ Dn) .* tile_B(SK_lane)) @ Dg
# with Dn = kron(I_S, F_N[:W,:]), Dg = kron(I_S, conj(F_N)[:,W:]),
#      G_M = conj(F_M)[H:,:];  scaling / crop / padding folded into the operands.
# ---------------------------------------------------------------------------
def _fft_conv_body(u_re_ref, u_im_ref, sk_re_ref, sk_im_ref,
                   fmu_re_ref, fmu_im_ref, dn_re_ref, dn_im_ref,
                   gm_re_ref, gm_im_ref, dg_re_ref, dg_im_ref,
                   o_re_ref, o_im_ref, *, batch):
    f32 = jnp.float32
    bf16 = jnp.bfloat16

    def cdot(ar, ai, br, bi):
        # Plain 4-matmul complex product (no Karatsuba: MXU has slack and this
        # is better conditioned with bf16 operands); f32 accumulation.
        rr = (jnp.dot(ar, br, preferred_element_type=f32)
              - jnp.dot(ai, bi, preferred_element_type=f32))
        ri = (jnp.dot(ar, bi, preferred_element_type=f32)
              + jnp.dot(ai, br, preferred_element_type=f32))
        return rr, ri

    ur = u_re_ref[...].astype(bf16)                                   # (H, S*W)
    ui = u_im_ref[...].astype(bf16)

    # fft along rows of every zero-padded slice (padding folded in the F_M slice)
    tr, ti = cdot(fmu_re_ref[...], fmu_im_ref[...], ur, ui)           # (M, S*W)
    # fft along cols of every slice at once via the block-diagonal operator
    sr, si = cdot(tr.astype(bf16), ti.astype(bf16),
                  dn_re_ref[...], dn_im_ref[...])                     # (M, S*N)

    # spectral product with the pre-scaled per-wavelength spectrum (kept f32);
    # SK arrives as (M, C*N) and is repeated along lanes for the B batch copies.
    skr = jnp.concatenate([sk_re_ref[...]] * batch, axis=1)           # (M, S*N)
    ski = jnp.concatenate([sk_im_ref[...]] * batch, axis=1)
    pr = sr * skr - si * ski
    pi = sr * ski + si * skr

    # cropped ifft2: crop and 1/(M*N) folded into the conj-DFT slices / SK
    t2r, t2i = cdot(gm_re_ref[...], gm_im_ref[...],
                    pr.astype(bf16), pi.astype(bf16))                 # (H, S*N)
    yr, yi = cdot(t2r.astype(bf16), t2i.astype(bf16),
                  dg_re_ref[...], dg_im_ref[...])                     # (H, S*W)
    o_re_ref[...] = yr                                                # lane-dense
    o_im_ref[...] = yi


def fraunhofer_prop(field_re, field_im, wavelengths, dx, dy, z):
    B, C, H, W = field_re.shape
    pad_h, pad_w = H // 2, W // 2                 # DEFAULT_PADDING_SCALE = [1, 1]
    M, N = H + 2 * pad_h, W + 2 * pad_w
    S = B * C                                     # lane-packed slice count

    # Spatial grid on the padded aperture.  Mirrors the reference
    # create_spatial_grid: linspace with BOTH endpoints and dx on both axes.
    x = jnp.linspace(-M * dx / 2.0, M * dx / 2.0, M, dtype=jnp.float32)
    y = jnp.linspace(-N * dx / 2.0, N * dx / 2.0, N, dtype=jnp.float32)
    meshx, meshy = jnp.meshgrid(x, y, indexing="ij")
    r2 = meshx * meshx + meshy * meshy + float(z) * float(z)
    r = jnp.sqrt(r2)                              # wavelength-independent
    # z/r^2 with the fft normalization dx*dy/(M*N) folded in host-side (no
    # in-kernel scale multiply, and K itself is never written back).
    scale = float(dx) * float(dy) / float(M * N)
    amp_scaled = (float(z) * scale) / r2

    # DFT matrices (tiny host-side glue); kept f32 for the SK builder.
    def dft(n):
        idx = jnp.arange(n, dtype=jnp.float32)
        ang = (-2.0 * np.pi / n) * (idx[:, None] * idx[None, :])
        return jnp.cos(ang), jnp.sin(ang)

    fm_re, fm_im = dft(M)
    fn_re, fn_im = dft(N)

    sk_re, sk_im = build_kernel_spectrum(
        wavelengths.astype(jnp.float32), r, amp_scaled,
        fm_re, fm_im, fn_re, fn_im)               # (C, M, N) each, f32

    # Re-layout SK so the conv kernel's spectrum operand is lane-dense: (M, C*N).
    sk_re_l = jnp.transpose(sk_re, (1, 0, 2)).reshape(M, C * N)
    sk_im_l = jnp.transpose(sk_im, (1, 0, 2)).reshape(M, C * N)

    # bf16 DFT operands for the per-slice conv kernel (f32 MXU accumulation).
    bf16 = jnp.bfloat16
    fmu_re = fm_re[:, :H].astype(bf16)            # (M, H)  fft rows + zero pad
    fmu_im = fm_im[:, :H].astype(bf16)
    gm_re = fm_re[H:, :].astype(bf16)             # (H, M)  conj(F_M)[H:, :]
    gm_im = (-fm_im[H:, :]).astype(bf16)
    # Block-diagonal right-hand operators: every (b, c) slice stays lane-packed
    # through the whole chain (no in-kernel transpose / per-slice loop).
    eye_s = jnp.eye(S, dtype=jnp.float32)
    dn_re = jnp.kron(eye_s, fn_re[:W, :]).astype(bf16)     # (S*W, S*N)
    dn_im = jnp.kron(eye_s, fn_im[:W, :]).astype(bf16)
    dg_re = jnp.kron(eye_s, fn_re[:, W:]).astype(bf16)     # (S*N, S*W)  conj
    dg_im = jnp.kron(eye_s, (-fn_im[:, W:])).astype(bf16)

    # Lane-pack the field: (B, C, H, W) -> (H, B*C*W), b-major / c / w-minor.
    u_re = jnp.transpose(field_re, (2, 0, 1, 3)).reshape(H, S * W)
    u_im = jnp.transpose(field_im, (2, 0, 1, 3)).reshape(H, S * W)

    def full(shape):
        nd = len(shape)
        return pl.BlockSpec(shape, lambda i, _nd=nd: (0,) * _nd)

    in_specs = [
        full((H, S * W)), full((H, S * W)),        # field slab re/im (f32)
        full((M, C * N)), full((M, C * N)),        # SK lane layout re/im (f32)
        full((M, H)), full((M, H)),                # F_M[:, :H]        (bf16)
        full((S * W, S * N)), full((S * W, S * N)),# kron(I_S, F_N[:W,:]) (bf16)
        full((H, M)), full((H, M)),                # conj(F_M)[H:, :]  (bf16)
        full((S * N, S * W)), full((S * N, S * W)),# kron(I_S, conj F_N[:,W:])
    ]
    out_specs = [full((H, S * W)), full((H, S * W))]
    out_shape = (jax.ShapeDtypeStruct((H, S * W), jnp.float32),
                 jax.ShapeDtypeStruct((H, S * W), jnp.float32))

    blk = [2 * H * S * W * 4,                      # field re/im
           2 * M * C * N * 4,                      # SK re/im
           2 * M * H * 2, 2 * (S * W) * (S * N) * 2,
           2 * H * M * 2, 2 * (S * N) * (S * W) * 2,
           2 * H * S * W * 4]                      # outputs
    o_re, o_im = pl.pallas_call(
        functools.partial(_fft_conv_body, batch=B),
        out_shape=out_shape,
        grid_spec=pltpu.PrefetchScalarGridSpec(
            num_scalar_prefetch=0,
            grid=(1,),
            in_specs=in_specs,
            out_specs=out_specs,
        ),
        compiler_params=pltpu.CompilerParams(
            dimension_semantics=("arbitrary",),
            vmem_limit_bytes=_vmem_limit_bytes(blk)),
    )(u_re, u_im, sk_re_l, sk_im_l,
      fmu_re, fmu_im, dn_re, dn_im, gm_re, gm_im, dg_re, dg_im)

    # Unpack the lane-dense slab back to (B, C, H, W) — layout plumbing only.
    out_re = jnp.transpose(o_re.reshape(H, B, C, W), (1, 2, 0, 3))
    out_im = jnp.transpose(o_im.reshape(H, B, C, W), (1, 2, 0, 3))
    return out_re, out_im, (M, N)


if __name__ == "__main__":
    B, C, H, W = 2, 4, 16, 16
    dx = dy = 1.0
    z = 2.0
    wavelengths = jnp.array([0.4, 0.5, 0.6, 0.7], dtype=jnp.float32)

    key = jax.random.PRNGKey(0)
    k1, k2 = jax.random.split(key)
    field_re = jax.random.normal(k1, (B, C, H, W), dtype=jnp.float32)
    field_im = jax.random.normal(k2, (B, C, H, W), dtype=jnp.float32)

    out_re, out_im, (M, N) = fraunhofer_prop(
        field_re, field_im, wavelengths, dx, dy, z)
    jax.block_until_ready((out_re, out_im))

    # Pure-JAX reference (jnp.fft) for a sanity check.
    xr = jnp.linspace(-M * dx / 2.0, M * dx / 2.0, M, dtype=jnp.float32)
    yr_ = jnp.linspace(-N * dx / 2.0, N * dx / 2.0, N, dtype=jnp.float32)
    mx, my = jnp.meshgrid(xr, yr_, indexing="ij")
    r2 = mx * mx + my * my + z * z
    r = jnp.sqrt(r2)
    lam = wavelengths[:, None, None]
    Kc = jnp.exp(1j * (2.0 * np.pi / lam) * r) * (z / (1j * lam * r2))  # (C,M,N)

    U = jnp.zeros((B, C, M, N), dtype=jnp.complex64)
    U = U.at[..., :H, :W].set(field_re + 1j * field_im)
    spec = jnp.fft.fft2(U) * jnp.fft.fft2(Kc)[None] * dx * dy
    ref = jnp.fft.ifft2(spec)[..., H:, W:]

    got = out_re + 1j * out_im
    err = float(jnp.max(jnp.abs(got - ref)))
    ref_scale = float(jnp.max(jnp.abs(ref))) + 1e-6
    # bf16 MXU operands in the conv kernel -> slightly looser tolerance than f32.
    if err > 3e-2 * ref_scale:
        raise AssertionError(f"mismatch: max_err={err}, scale={ref_scale}")

    print("KERNEL_OK")
</pallas_src>

<mosaic_0001>
module attributes {stable_mosaic.version = 11 : i64} {
  func.func @_kernel_spectrum_body(%arg0: i32, %arg1: memref<4xf32, #tpu.memory_space<smem>>, %arg2: memref<32x32xf32, #tpu.memory_space<vmem>>, %arg3: memref<32x32xf32, #tpu.memory_space<vmem>>, %arg4: memref<32x32xf32, #tpu.memory_space<vmem>>, %arg5: memref<32x32xf32, #tpu.memory_space<vmem>>, %arg6: memref<32x32xf32, #tpu.memory_space<vmem>>, %arg7: memref<32x32xf32, #tpu.memory_space<vmem>>, %arg8: memref<1x32x32xf32, #tpu.memory_space<vmem>>, %arg9: memref<1x32x32xf32, #tpu.memory_space<vmem>>) attributes {dimension_semantics = [#tpu.dimension_semantics<parallel>], iteration_bounds = array<i64: 4>, scalar_prefetch = 0 : i64, scratch_operands = 0 : i64, tpu.core_type = #tpu.core_type<tc>, window_params = [{transform_indices = @transform_0, window_bounds = array<i64: 4>}, {pipeline_mode = #tpu.pipeline_mode<synchronous>, transform_indices = @transform_1, window_bounds = array<i64: 32, 32>}, {pipeline_mode = #tpu.pipeline_mode<synchronous>, transform_indices = @transform_2, window_bounds = array<i64: 32, 32>}, {pipeline_mode = #tpu.pipeline_mode<synchronous>, transform_indices = @transform_3, window_bounds = array<i64: 32, 32>}, {pipeline_mode = #tpu.pipeline_mode<synchronous>, transform_indices = @transform_4, window_bounds = array<i64: 32, 32>}, {pipeline_mode = #tpu.pipeline_mode<synchronous>, transform_indices = @transform_5, window_bounds = array<i64: 32, 32>}, {pipeline_mode = #tpu.pipeline_mode<synchronous>, transform_indices = @transform_6, window_bounds = array<i64: 32, 32>}, {transform_indices = @transform_7, window_bounds = array<i64: 1, 32, 32>}, {transform_indices = @transform_8, window_bounds = array<i64: 1, 32, 32>}]} {
    %0 = arith.index_cast %arg0 : i32 to index
    %1 = memref.load %arg1[%0] : memref<4xf32, #tpu.memory_space<smem>>
    %cst = arith.constant 1.000000e+00 : f32
    %2 = arith.divf %cst, %1 : f32
    %cst_0 = arith.constant 6.28318548 : f32
    %3 = arith.mulf %cst_0, %2 : f32
    %c0 = arith.constant 0 : index
    %c0_1 = arith.constant 0 : index
    %4 = vector.load %arg2[%c0, %c0_1] : memref<32x32xf32, #tpu.memory_space<vmem>>, vector<32x32xf32>
    %5 = vector.broadcast %3 : f32 to vector<32x32xf32>
    %6 = arith.mulf %5, %4 : vector<32x32xf32>
    %c0_2 = arith.constant 0 : index
    %c0_3 = arith.constant 0 : index
    %7 = vector.load %arg3[%c0_2, %c0_3] : memref<32x32xf32, #tpu.memory_space<vmem>>, vector<32x32xf32>
    %8 = vector.broadcast %2 : f32 to vector<32x32xf32>
    %9 = arith.mulf %7, %8 : vector<32x32xf32>
    %10 = math.sin %6 : vector<32x32xf32>
    %11 = arith.mulf %9, %10 : vector<32x32xf32>
    %cst_4 = arith.constant 0.000000e+00 : f32
    %12 = vector.broadcast %cst_4 : f32 to vector<32x32xf32>
    %13 = arith.subf %12, %9 : vector<32x32xf32>
    %14 = math.cos %6 : vector<32x32xf32>
    %15 = arith.mulf %13, %14 : vector<32x32xf32>
    %c0_5 = arith.constant 0 : index
    %c0_6 = arith.constant 0 : index
    %16 = vector.load %arg4[%c0_5, %c0_6] : memref<32x32xf32, #tpu.memory_space<vmem>>, vector<32x32xf32>
    %c0_7 = arith.constant 0 : index
    %c0_8 = arith.constant 0 : index
    %17 = vector.load %arg5[%c0_7, %c0_8] : memref<32x32xf32, #tpu.memory_space<vmem>>, vector<32x32xf32>
    %cst_9 = arith.constant dense<0.000000e+00> : vector<32x32xf32>
    %18 = tpu.matmul %16, %11, %cst_9 {dimension_numbers = #tpu.dot_dimension_numbers<[1], [0], [0], [1], [0, 0, 1, 1], [], []>} : vector<32x32xf32>, vector<32x32xf32>, vector<32x32xf32> -> vector<32x32xf32>
    %cst_10 = arith.constant dense<0.000000e+00> : vector<32x32xf32>
    %19 = tpu.matmul %17, %15, %cst_10 {dimension_numbers = #tpu.dot_dimension_numbers<[1], [0], [0], [1], [0, 0, 1, 1], [], []>} : vector<32x32xf32>, vector<32x32xf32>, vector<32x32xf32> -> vector<32x32xf32>
    %20 = arith.subf %18, %19 : vector<32x32xf32>
    %cst_11 = arith.constant dense<0.000000e+00> : vector<32x32xf32>
    %21 = tpu.matmul %16, %15, %cst_11 {dimension_numbers = #tpu.dot_dimension_numbers<[1], [0], [0], [1], [0, 0, 1, 1], [], []>} : vector<32x32xf32>, vector<32x32xf32>, vector<32x32xf32> -> vector<32x32xf32>
    %cst_12 = arith.constant dense<0.000000e+00> : vector<32x32xf32>
    %22 = tpu.matmul %17, %11, %cst_12 {dimension_numbers = #tpu.dot_dimension_numbers<[1], [0], [0], [1], [0, 0, 1, 1], [], []>} : vector<32x32xf32>, vector<32x32xf32>, vector<32x32xf32> -> vector<32x32xf32>
    %23 = arith.addf %21, %22 : vector<32x32xf32>
    %c0_13 = arith.constant 0 : index
    %c0_14 = arith.constant 0 : index
    %24 = vector.load %arg6[%c0_13, %c0_14] : memref<32x32xf32, #tpu.memory_space<vmem>>, vector<32x32xf32>
    %c0_15 = arith.constant 0 : index
    %c0_16 = arith.constant 0 : index
    %25 = vector.load %arg7[%c0_15, %c0_16] : memref<32x32xf32, #tpu.memory_space<vmem>>, vector<32x32xf32>
    %cst_17 = arith.constant dense<0.000000e+00> : vector<32x32xf32>
    %26 = tpu.matmul %20, %24, %cst_17 {dimension_numbers = #tpu.dot_dimension_numbers<[1], [0], [0], [1], [0, 0, 1, 1], [], []>} : vector<32x32xf32>, vector<32x32xf32>, vector<32x32xf32> -> vector<32x32xf32>
    %cst_18 = arith.constant dense<0.000000e+00> : vector<32x32xf32>
    %27 = tpu.matmul %23, %25, %cst_18 {dimension_numbers = #tpu.dot_dimension_numbers<[1], [0], [0], [1], [0, 0, 1, 1], [], []>} : vector<32x32xf32>, vector<32x32xf32>, vector<32x32xf32> -> vector<32x32xf32>
    %28 = arith.subf %26, %27 : vector<32x32xf32>
    %c0_19 = arith.constant 0 : index
    %c0_20 = arith.constant 0 : index
    %c0_21 = arith.constant 0 : index
    %29 = vector.load %arg8[%c0_19, %c0_20, %c0_21] : memref<1x32x32xf32, #tpu.memory_space<vmem>>, vector<1x32x32xf32>
    %30 = vector.shape_cast %29 : vector<1x32x32xf32> to vector<32x32xf32>
    %31 = vector.shape_cast %28 : vector<32x32xf32> to vector<1x32x32xf32>
    tpu.vector_store %arg8[%c0_19, %c0_20, %c0_21], %31 {strides = array<i32>} : memref<1x32x32xf32, #tpu.memory_space<vmem>>, vector<1x32x32xf32>,
    %cst_22 = arith.constant dense<0.000000e+00> : vector<32x32xf32>
    %32 = tpu.matmul %20, %25, %cst_22 {dimension_numbers = #tpu.dot_dimension_numbers<[1], [0], [0], [1], [0, 0, 1, 1], [], []>} : vector<32x32xf32>, vector<32x32xf32>, vector<32x32xf32> -> vector<32x32xf32>
    %cst_23 = arith.constant dense<0.000000e+00> : vector<32x32xf32>
    %33 = tpu.matmul %23, %24, %cst_23 {dimension_numbers = #tpu.dot_dimension_numbers<[1], [0], [0], [1], [0, 0, 1, 1], [], []>} : vector<32x32xf32>, vector<32x32xf32>, vector<32x32xf32> -> vector<32x32xf32>
    %34 = arith.addf %32, %33 : vector<32x32xf32>
    %c0_24 = arith.constant 0 : index
    %c0_25 = arith.constant 0 : index
    %c0_26 = arith.constant 0 : index
    %35 = vector.load %arg9[%c0_24, %c0_25, %c0_26] : memref<1x32x32xf32, #tpu.memory_space<vmem>>, vector<1x32x32xf32>
    %36 = vector.shape_cast %35 : vector<1x32x32xf32> to vector<32x32xf32>
    %37 = vector.shape_cast %34 : vector<32x32xf32> to vector<1x32x32xf32>
    tpu.vector_store %arg9[%c0_24, %c0_25, %c0_26], %37 {strides = array<i32>} : memref<1x32x32xf32, #tpu.memory_space<vmem>>, vector<1x32x32xf32>,
    return
  }
  func.func @transform_0(%arg0: i32) -> i32 {
    %c0_i32 = arith.constant 0 : i32
    %c0_i32_0 = arith.constant 0 : i32
    return %c0_i32 : i32
  }
  func.func @transform_1(%arg0: i32) -> (i32, i32) {
    %c0_i32 = arith.constant 0 : i32
    %c0_i32_0 = arith.constant 0 : i32
    %c0_i32_1 = arith.constant 0 : i32
    return %c0_i32, %c0_i32_0 : i32, i32
  }
  func.func @transform_2(%arg0: i32) -> (i32, i32) {
    %c0_i32 = arith.constant 0 : i32
    %c0_i32_0 = arith.constant 0 : i32
    %c0_i32_1 = arith.constant 0 : i32
    return %c0_i32, %c0_i32_0 : i32, i32
  }
  func.func @transform_3(%arg0: i32) -> (i32, i32) {
    %c0_i32 = arith.constant 0 : i32
    %c0_i32_0 = arith.constant 0 : i32
    %c0_i32_1 = arith.constant 0 : i32
    return %c0_i32, %c0_i32_0 : i32, i32
  }
  func.func @transform_4(%arg0: i32) -> (i32, i32) {
    %c0_i32 = arith.constant 0 : i32
    %c0_i32_0 = arith.constant 0 : i32
    %c0_i32_1 = arith.constant 0 : i32
    return %c0_i32, %c0_i32_0 : i32, i32
  }
  func.func @transform_5(%arg0: i32) -> (i32, i32) {
    %c0_i32 = arith.constant 0 : i32
    %c0_i32_0 = arith.constant 0 : i32
    %c0_i32_1 = arith.constant 0 : i32
    return %c0_i32, %c0_i32_0 : i32, i32
  }
  func.func @transform_6(%arg0: i32) -> (i32, i32) {
    %c0_i32 = arith.constant 0 : i32
    %c0_i32_0 = arith.constant 0 : i32
    %c0_i32_1 = arith.constant 0 : i32
    return %c0_i32, %c0_i32_0 : i32, i32
  }
  func.func @transform_7(%arg0: i32) -> (i32, i32, i32) {
    %c0_i32 = arith.constant 0 : i32
    %c0_i32_0 = arith.constant 0 : i32
    %c0_i32_1 = arith.constant 0 : i32
    return %arg0, %c0_i32, %c0_i32_0 : i32, i32, i32
  }
  func.func @transform_8(%arg0: i32) -> (i32, i32, i32) {
    %c0_i32 = arith.constant 0 : i32
    %c0_i32_0 = arith.constant 0 : i32
    %c0_i32_1 = arith.constant 0 : i32
    return %arg0, %c0_i32, %c0_i32_0 : i32, i32, i32
  }
}

</mosaic_0001>

<bundles_post_ra>
// kernel: tpu_custom_call.1
= control target key start
LH: loop header
LB: loop body
LE: loop exit
PB: predicated region body
PF: predicated region fallthrough
CT: control target
= control target key end

     0   :  { %s3522_s0 = inlined_call_operand.hbm [shape: f32[4], index: 0, kind: input, shape index: {}]   ;;  %s3523_s1 = inlined_call_operand.hbm [shape: f32[32,32], index: 1, kind: input, shape index: {}]   ;;  %s3524_s2 = inlined_call_operand.hbm [shape: f32[32,32], index: 2, kind: input, shape index: {}]   ;;  %s3525_s3 = inlined_call_operand.hbm [shape: f32[32,32], index: 3, kind: input, shape index: {}]   ;;  %s3526_s4 = inlined_call_operand.hbm [shape: f32[32,32], index: 4, kind: input, shape index: {}]   ;;  %s3527_s5 = inlined_call_operand.hbm [shape: f32[32,32], index: 5, kind: input, shape index: {}]   ;;  %s3528_s6 = inlined_call_operand.hbm [shape: f32[32,32], index: 6, kind: input, shape index: {}]   ;;  %s3529_s7 = inlined_call_operand.hbm [shape: f32[4,32,32], index: 7, kind: output, shape index: {0}]   ;;  %s3530_s8 = inlined_call_operand.hbm [shape: f32[4,32,32], index: 8, kind: output, shape index: {1}]  }
   0x1   :  { %3531 = sst [smem:[#allocation25_spill]] %s3522_s0 }
   0x2   :  { %3532 = sst [smem:[#allocation26_spill]] %s3524_s2 }
   0x3   :  { %3533 = sst [smem:[#allocation27_spill]] %s3526_s4 }
   0x4   :  { %14 = vsyncpa [#allocation5], 0 }
   0x5   :  { %15 = vsyncpa [#allocation3], 0 }
   0x6   :  { %16 = vsyncpa [#allocation8], 0 }
   0x7   :  { %17 = vsyncpa [#allocation11], 0 }
   0x8   :  { %18 = vsyncpa [#allocation14], 0 }
   0x9   :  { %19 = vsyncpa [#allocation4], 0 }
   0xa   :  { %21 = vsyncpa [#allocation4 + $0x1], 0 }
   0xb   :  { %22 = vsyncpa [#allocation17], 0 }
   0xc   :  { %24 = vsyncpa [#allocation17 + $0x1], 0  ;;  %s2788_s27 = smov 0   ;;  %s2790_s28 = smov 0  }
   0xd   :  { %s2792_s29 = smov 0   ;;  %s2794_s30 = smov 0  }
   0xe LB: > { %s2809_s9 = sadd.s32 4294967295, %s2723_s30   ;;  %s2199_s10 = sadd.s32 4294967294, %s2723_s30   ;;  %s2723_s30 = sphi %s2794_s30, %s3550_s30   ;;  %s2719_s29 = sphi %s2792_s29, %s3549_s29   ;;  %s2715_s28 = sphi %s2790_s28, %s3548_s28   ;;  %s2711_s27 = sphi %s2788_s27, %s3547_s27  }
   0xf   : > { %s2813_s11 = sadd.s32 1, %s2723_s30   ;;  %s184_s12 = sadd.s32 1, %s2719_s29 }
  0x10   : > { %s181_s13 = ssub.s32 %s2723_s30, %s2813_s11  ;;  %p194_p0 = scmp.ne.s32.totalorder %s2719_s29, %s2715_s28 }
  0x11   : > { %p182_p1 = scmp.eq.s32.totalorder %s181_s13, 0  ;;  %p195_p2 = scmp.eq.s32.totalorder %s2809_s9, 3 }
  0x12   : > { %p200_p3 = scmp.ne.s32.totalorder %s2715_s28, %s2711_s27  ;;  %p201_p4 = scmp.eq.s32.totalorder %s2199_s10, 3 }
  0x13   : > { %s2824_s14 = scalar_select %p182_p1, %s2719_s29, %s184_s12  }
  0x14   : > { %p2826_p5 = por %p195_p2, %p194_p0  ;;  %p2830_p6 = por %p201_p4, %p200_p3 }
  0x15   : > { %p2200_p7 = scmp.ge.s32.totalorder %s2723_s30, 1  ;;  %p234_p8 = scmp.lt.s32.totalorder %s2723_s30, 5 }
  0x16   : > { %p2347_p9 = scmp.eq.s32.totalorder %s2809_s9, 0  ;;  %s3537_s2 = sld [smem:[#allocation26_spill]] }
  0x17   : > { %p2837_p10 = pnand %p2200_p7, %p234_p8  ;;  %s3538_s4 = sld [smem:[#allocation27_spill]] }
  0x18   : > { %s2725_s25 = smov [#allocation7]   ;;  %s2726_s10 = smov 128  }
  0x19   : > { %p2318_p11 = pneg %p2837_p10  ;;  %s271_s26 = sshll.u32 %s2725_s25, 4  ;;  %s272_s26 = int_to_ptr.vmem [resolvable:$true] %s271_s26 }
  0x1a   : > { %s2727_s12 = smov 8   ;;  %s2728_s13 = smov [#allocation10]  }
  0x1b   : > { %p2851_p12 = pnand %p2347_p9, %p2318_p11  ;;  %s299_s18 = sshll.u32 %s2728_s13, 4  ;;  %s300_s18 = int_to_ptr.vmem [resolvable:$true] %s299_s18 }
  0x1c   : > { %s269_s20 = sshll.u32 %s3537_s2, 4  ;;  %s3540_s0 = sld [smem:[#allocation25_spill]]  ;;  %s270_s20 = int_to_ptr.hbm [resolvable:$true] %s269_s20 }
  0x1d   : > { %s297_s23 = sshll.u32 %s3538_s4, 4  ;;  %s255_s4 = sshll.u32 %s3523_s1, 4  ;;  %s298_s23 = int_to_ptr.hbm [resolvable:$true] %s297_s23  ;;  %s256_s4 = int_to_ptr.hbm [resolvable:$true] %s255_s4 }
  0x1e   : > { %2327 = dma.hbm_to_vmem [thread:$0]  (!%p2851_p12), %s270_s20, 512, %s272_s26, [#allocation8], %s2726_s10, %s2726_s10, %s2727_s12  }
  0x1f   : > { %2333 = dma.hbm_to_vmem [thread:$0]  (!%p2851_p12), %s298_s23, 512, %s300_s18, [#allocation11], %s2726_s10, %s2726_s10, %s2727_s12  }
  0x20   : > { %s2729_s20 = smov [#allocation2]   ;;  %s2730_s26 = smov [#allocation6]  }
  0x21   : > { %s257_s13 = sshll.u32 %s2730_s26, 4  ;;  %s311_s18 = sshll.u32 %s3527_s5, 4  ;;  %s258_s13 = int_to_ptr.vmem [resolvable:$true] %s257_s13  ;;  %s312_s18 = int_to_ptr.hbm [resolvable:$true] %s311_s18 }
  0x22   : > { %s246_s22 = sshll.u32 %s3540_s0, 4  ;;  %s283_s0 = sshll.u32 %s3525_s3, 4  ;;  %s247_s22 = int_to_ptr.hbm [resolvable:$true] %s246_s22  ;;  %s284_s0 = int_to_ptr.hbm [resolvable:$true] %s283_s0 }
  0x23   : > { %2321 = dma.hbm_to_smem (!%p2851_p12), %s247_s22, 16, %s2729_s20, [#allocation5]  }
  0x24   : > { %2324 = dma.hbm_to_vmem [thread:$0]  (!%p2851_p12), %s256_s4, 512, %s258_s13, [#allocation3], %s2726_s10, %s2726_s10, %s2727_s12  }
  0x25   : > { %s2731_s22 = smov [#allocation9]   ;;  %s2732_s20 = smov [#allocation12]  }
  0x26   : > { %s285_s25 = sshll.u32 %s2731_s22, 4  ;;  %s313_s26 = sshll.u32 %s2732_s20, 4  ;;  %s286_s25 = int_to_ptr.vmem [resolvable:$true] %s285_s25  ;;  %s314_s26 = int_to_ptr.vmem [resolvable:$true] %s313_s26 }
  0x27   : > { %2330 = dma.hbm_to_vmem [thread:$0]  (!%p2851_p12), %s284_s0, 512, %s286_s25, [#allocation8], %s2726_s10, %s2726_s10, %s2727_s12  }
  0x28   : > { %s325_s4 = sshll.u32 %s3528_s6, 4  ;;  %s2733_s13 = smov [#allocation13]   ;;  %s326_s4 = int_to_ptr.hbm [resolvable:$true] %s325_s4 }
  0x29   : > { %2336 = dma.hbm_to_vmem [thread:$0]  (!%p2851_p12), %s312_s18, 512, %s314_s26, [#allocation11], %s2726_s10, %s2726_s10, %s2727_s12  }
  0x2a   : > { %s327_s2 = sshll.u32 %s2733_s13, 4  ;;  %343 = sbr.rel (%p2837_p10) target bundleno = 640 (0x280), region = 48  ;;  %s328_s2 = int_to_ptr.vmem [resolvable:$true] %s327_s2 }
  0x2b   : > { %2339 = dma.hbm_to_vmem [thread:$0]  (!%p2851_p12), %s326_s4, 512, %s328_s2, [#allocation14], %s2726_s10, %s2726_s10, %s2727_s12  }
  0x2f   : > { %2682 = dma.done.wait (%p2347_p9), [#allocation5], 16  }
  0x30   : > { %2684 = vsyncadd (%p2347_p9), [#allocation5], 4294967280 }
  0x31   : > { %2686 = dma.done.wait (%p2347_p9), [#allocation3], 512  }
  0x32   : > { %2688 = vsyncadd (%p2347_p9), [#allocation3], 4294966784 }
  0x33   : > { %2690 = dma.done.wait (%p2347_p9), [#allocation8], 1024  }
  0x34   : > { %2692 = vsyncadd (%p2347_p9), [#allocation8], 4294966272 }
  0x35   : > { %2694 = dma.done.wait (%p2347_p9), [#allocation11], 1024  }
  0x36   : > { %2696 = vsyncadd (%p2347_p9), [#allocation11], 4294966272 }
  0x37   : > { %2698 = dma.done.wait (%p2347_p9), [#allocation14], 512  }
  0x38   : > { %2700 = vsyncadd (%p2347_p9), [#allocation14], 4294966784 }
  0x39   : > { %380 = sfence }
  0x3a   : > { %s409_s0 = sld [smem:[#allocation2 + %s2809_s9]]  ;;  %v429_v11 = vld [vmem:[#allocation6 + $0x10] sm:$0xff]  ;;  %v430_v12 = vld [vmem:[#allocation6 + $0x18] sm:$0xff]  ;;  %v427_v13 = vld [vmem:[#allocation6] sm:$0xff]  ;;  %v2734_v50 = vmov 683565275  }
  0x3b   : > { %v428_v14 = vld [vmem:[#allocation6 + $0x8] sm:$0xff]  ;;  %v2735_v52 = vmov 2475754826   ;;  %v2736_v56 = vmov 2131351028   ;;  %s3448_s10 = sand.u32 1, %s2715_s28  }
  0x3c   : > { %v2737_v59 = vmov 2102212464   ;;  %v2738_v62 = vmov 920167782   ;;  %s2216_s12 = sshll.u32 %s3448_s10, 5  ;;  %s2282_s22 = sshll.u32 %s2809_s9, 5 }
  0x3d   : > { %s3451_s23 = scalar_lea.vmem [#allocation15], %s2216_s12  ;;  %s3455_s18 = scalar_lea.vmem [#allocation16], %s2216_s12 }
  0x3e   : > { %s2023_s26 = scalar_lea.hbm %s3529_s7, %s2282_s22  ;;  %s2024_s19 = sshll.u32 %s3451_s23, 4  ;;  %s3470_s19 = int_to_ptr.vmem [resolvable:$true] %s2024_s19 }
  0x3f   : > { %s2026_s21 = sshll.u32 %s2023_s26, 4  ;;  %s2040_s13 = scalar_lea.hbm %s3530_s8, %s2282_s22  ;;  %s2027_s21 = int_to_ptr.hbm [resolvable:$true] %s2026_s21 }
  0x40   : > { %v410_v0 = vstv %s409_s0  ;;  %s2041_s2 = sshll.u32 %s3455_s18, 4  ;;  %s2043_s0 = sshll.u32 %s2040_s13, 4  ;;  %s2042_s2 = int_to_ptr.vmem [resolvable:$true] %s2041_s2  ;;  %s2044_s0 = int_to_ptr.hbm [resolvable:$true] %s2043_s0 }
  0x41   : > { %2412 = vrcp.f32 %v410_v0  ;;  %v422_v3 = vand.u32 2147483648, %v410_v0  ;;  %vm416_vm0 = vweird.f32 %v410_v0  ;;  %v420_v5 = vand.u32 2147483647, %v410_v0  ;;  %s2629_s22 = scalar_lea.hbm %s3529_s7, 128 }
  0x43   : > { %v423_v7 = vor.u32 1.1754944e-38, %v422_v3  ;;  %vm421_vm3 = vcmp.eq.f32.partialorder %v420_v5, 8.507059e+37 }
  0x47   : > { %v2413_v1 = vpop.eup %2412 }
  0x48   : > { %v412_v2 = vmul.f32 %v2413_v1, %v410_v0  ;;  %vm417_vm1 = vweird.f32 %v2413_v1 }
  0x49   : > { %vm418_vm2 = vmor %vm416_vm0, %vm417_vm1 }
  0x4a   : > { %v413_v4 = vsub.f32 1.0, %v412_v2 }
  0x4c   : > { %v414_v6 = vmul.f32 %v2413_v1, %v413_v4 }
  0x4e   : > { %v415_v8 = vadd.f32 %v2413_v1, %v414_v6 }
  0x50   : > { %v419_v9 = vsel %vm418_vm2, %v2413_v1, %v415_v8  ;;  %v2739_v1 = vmov 1326507024  }
  0x51   : > { %v424_v10 = vsel %vm421_vm3, %v423_v7, %v419_v9 }
  0x52   : > { %2284 = vpush %v424_v10 }
  0x83   : > { %s2925_s17 = spop %2284 }
  0x84   : > { %s426_s24 = smul.f32 6.2831855, %s2925_s17  ;;  %v2953_v42 = vstv %s2925_s17  ;;  %s2007_s17 = scalar_lea.sflag [#allocation4], %s3448_s10 }
  0x86   : > { %v431_v15 = vstv %s426_s24  ;;  %s2623_s24 = sshra.s32 %s2027_s21, 4  ;;  %s2624_s24 = int_to_ptr.hbm [resolvable:$true] %s2623_s24 }
  0x87   : > { %v2928_v16 = vmul.f32 %v431_v15, %v429_v11  ;;  %v2930_v17 = vmul.f32 %v431_v15, %v430_v12  ;;  %v2932_v18 = vmul.f32 %v431_v15, %v427_v13  ;;  %v2934_v19 = vmul.f32 %v431_v15, %v428_v14  ;;  %s2625_s12 = scalar_lea.hbm %s2624_s24, 32  ;;  %p2630_p2 = scmp.lt.s32.totalorder %s2624_s24, %s3529_s7 }
  0x88   : > { %p2626_p13 = scmp.ne.s32.totalorder %s2624_s24, %s2625_s12  ;;  %p2631_p3 = scmp.lt.s32.totalorder %s2629_s22, %s2625_s12 }
  0x89   : > { %v758_v20 = vand.u32 2139095040, %v2928_v16  ;;  %v913_v21 = vand.u32 2139095040, %v2930_v17  ;;  %v910_v22 = vand.u32 2147483647, %v2930_v17  ;;  %v448_v26 = vand.u32 2139095040, %v2932_v18 }
  0x8a   : > { %v603_v27 = vand.u32 2139095040, %v2934_v19  ;;  %v755_v30 = vand.u32 2147483647, %v2928_v16  ;;  %p2627_p0 = pnand %p2626_p13, %p2826_p5  ;;  %p2632_p4 = por %p2631_p3, %p2630_p2 }
  0x8b   : > { %v759_v23 = vshrl.u32 %v758_v20, 23  ;;  %v914_v24 = vshrl.u32 %v913_v21, 23  ;;  %v917_v25 = vand.u32 8388607, %v910_v22  ;;  %v449_v34 = vshrl.u32 %v448_v26, 23 }
  0x8c   : > { %v604_v35 = vshrl.u32 %v603_v27, 23  ;;  %v2946_v38 = vand.u32 8388607, %v755_v30  ;;  %p2628_p1 = pneg %p2627_p0 }
  0x8d   : > { %v2224_v28 = vadd.s32 4294967169, %v759_v23  ;;  %v2227_v29 = vadd.s32 4294967169, %v914_v24  ;;  %v918_v33 = vor.u32 8388608, %v917_v25  ;;  %v2955_v43 = vadd.s32 4294967169, %v449_v34 }
  0x8e   : > { %v2957_v44 = vadd.s32 4294967169, %v604_v35  ;;  %v763_v48 = vor.u32 8388608, %v2946_v38  ;;  %p2633_p7 = pnand %p2632_p4, %p2628_p1 }
  0x8f   : > { %v765_v31 = vadd.s32 1, %v2224_v28  ;;  %v920_v32 = vadd.s32 1, %v2227_v29  ;;  %v2948_v39 = vshll.u32 %v918_v33, 8 }
  0x91   : > { %vm766_vm4 = vcmp.gt.s32.totalorder %v765_v31, 0  ;;  %vm921_vm5 = vcmp.gt.s32.totalorder %v920_v32, 0  ;;  %v959_v54 = vand.u32 65535, %v2948_v39  ;;  %v960_v26 = vshrl.u32 %v2948_v39, 16 }
  0x92   : > { %v767_v36 = vsel %vm766_vm4, %v765_v31, 0  ;;  %v922_v37 = vsel %vm921_vm5, %v920_v32, 0 }
  0x93   : > { %v2950_v40 = vand.u32 31, %v767_v36  ;;  %v924_v41 = vand.u32 31, %v922_v37  ;;  %v2959_v45 = vshrl.u32 %v767_v36, 5  ;;  %v923_v46 = vshrl.u32 %v922_v37, 5 }
  0x95   : > { %v925_v47 = vsub.s32 32, %v924_v41  ;;  %v2963_v49 = vsub.s32 32, %v2950_v40  ;;  %v927_v51 = vshll.u32 %v2734_v50, %v924_v41  ;;  %v930_v53 = vshll.u32 %v2735_v52, %v924_v41 }
  0x96   : > { %v933_v58 = vshll.u32 %v2736_v56, %v924_v41  ;;  %v936_v61 = vshll.u32 %v2737_v59, %v924_v41  ;;  %v939_v0 = vshll.u32 %v2738_v62, %v924_v41  ;;  %vm942_vm6 = vcmp.lt.s32.totalorder %v923_v46, 1 }
  0x97   : > { %v928_v55 = vshrl.u32 %v2735_v52, %v925_v47  ;;  %v931_v57 = vshrl.u32 %v2736_v56, %v925_v47  ;;  %v934_v60 = vshrl.u32 %v2737_v59, %v925_v47  ;;  %v937_v63 = vshrl.u32 %v2738_v62, %v925_v47 }
  0x98   : > { %v940_v2 = vshrl.u32 %v2739_v1, %v925_v47  ;;  %v926_v6 = vshrl.u32 %v2734_v50, %v925_v47  ;;  %vm945_vm7 = vcmp.lt.s32.totalorder %v923_v46, 4  ;;  %vm943_vm8 = vcmp.lt.s32.totalorder %v923_v46, 2 }
  0x99   : > { %v929_v3 = vor.u32 %v928_v55, %v927_v51  ;;  %v932_v4 = vor.u32 %v931_v57, %v930_v53  ;;  %v935_v5 = vor.u32 %v934_v60, %v933_v58  ;;  %v938_v7 = vor.u32 %v937_v63, %v936_v61 }
  0x9a   : > { %v941_v8 = vor.u32 %v940_v2, %v939_v0  ;;  %vm944_vm9 = vcmp.lt.s32.totalorder %v923_v46, 3  ;;  %v773_v14 = vshrl.u32 %v2735_v52, %v2963_v49  ;;  %v772_v27 = vshll.u32 %v2734_v50, %v2950_v40 }
  0x9b   : > { %v947_v9 = vsel %vm945_vm7, %v935_v5, 2102212464  ;;  %v950_v10 = vsel %vm942_vm6, %v929_v3, %v932_v4  ;;  %v954_v11 = vsel %vm942_vm6, %v932_v4, %v935_v5  ;;  %v951_v12 = vsel %vm945_vm7, %v938_v7, 920167782 }
  0x9c   : > { %v955_v13 = vsel %vm945_vm7, %v941_v8, 1326507024  ;;  %v946_v15 = vsel %vm942_vm6, %v926_v6, %v929_v3  ;;  %v948_v20 = vsel %vm944_vm9, %v932_v4, %v947_v9  ;;  %v952_v21 = vsel %vm944_vm9, %v935_v5, %v951_v12 }
  0x9d   : > { %v956_v23 = vsel %vm944_vm9, %v938_v7, %v955_v13  ;;  %v953_v24 = vsel %vm943_vm8, %v950_v10, %v952_v21  ;;  %v2985_v33 = vsel %vm943_vm8, %v946_v15, %v948_v20  ;;  %v2987_v34 = vor.u32 %v773_v14, %v772_v27 }
  0x9e   : > { %v957_v25 = vsel %vm943_vm8, %v954_v11, %v956_v23  ;;  %v983_v31 = vand.u32 65535, %v953_v24  ;;  %v984_v32 = vshrl.u32 %v953_v24, 16  ;;  %v775_v35 = vshll.u32 %v2735_v52, %v2950_v40 }
  0x9f   : > { %v961_v28 = vand.u32 65535, %v957_v25  ;;  %v962_v29 = vshrl.u32 %v957_v25, 16  ;;  %v776_v36 = vshrl.u32 %v2736_v56, %v2963_v49  ;;  %v778_v47 = vshll.u32 %v2736_v56, %v2950_v40 }
  0xa0   : > { %v779_v51 = vshrl.u32 %v2737_v59, %v2963_v49  ;;  %v986_v46 = vmul.u32 %v984_v32, %v959_v54  ;;  %v987_v55 = vmul.u32 %v983_v31, %v960_v26  ;;  %v781_v57 = vshll.u32 %v2737_v59, %v2950_v40 }
  0xa1   : > { %v964_v37 = vmul.u32 %v962_v29, %v959_v54  ;;  %v965_v41 = vmul.u32 %v961_v28, %v960_v26  ;;  %v963_v53 = vmul.u32 %v961_v28, %v959_v54  ;;  %v966_v58 = vmul.u32 %v962_v29, %v960_v26 }
  0xa2   : > { %v985_v61 = vmul.u32 %v983_v31, %v959_v54  ;;  %v988_v63 = vmul.u32 %v984_v32, %v960_v26  ;;  %v989_v4 = vshll.u32 %v986_v46, 16  ;;  %v991_v6 = vshll.u32 %v987_v55, 16 }
  0xa3   : > { %v967_v60 = vshll.u32 %v964_v37, 16  ;;  %v968_v0 = vshrl.u32 %v964_v37, 16  ;;  %v969_v2 = vshll.u32 %v965_v41, 16  ;;  %v970_v3 = vshrl.u32 %v965_v41, 16 }
  0xa4   : > { %v2999_v7 = vor.u32 %v776_v36, %v775_v35  ;;  %v2740_v8 = vmov 0   ;;  %vm993_vm11 = vc.u32 %v985_v61, %v989_v4  ;;  %v995_v10 = vadd.s32 %v989_v4, %v985_v61 }
  0xa5   : > { %vm971_vm10 = vc.u32 %v963_v53, %v967_v60  ;;  %v973_v5 = vadd.s32 %v967_v60, %v963_v53  ;;  %v782_v11 = vshrl.u32 %v2738_v62, %v2963_v49  ;;  %v994_v54 = vsel %vm993_vm11, 1, %v2740_v8 }
  0xa6   : > { %v972_v9 = vsel %vm971_vm10, 1, %v2740_v8  ;;  %v780_v13 = vor.u32 %v779_v51, %v778_v47  ;;  %v996_v15 = vadd.s32 %v994_v54, %v988_v63  ;;  %vm997_vm13 = vc.u32 %v995_v10, %v991_v6 }
  0xa7   : > { %v974_v12 = vadd.s32 %v972_v9, %v966_v58  ;;  %vm975_vm12 = vc.u32 %v973_v5, %v969_v2  ;;  %v784_v20 = vshll.u32 %v2738_v62, %v2950_v40  ;;  %v998_v23 = vsel %vm997_vm13, 1, %v2740_v8  ;;  %v439_v2 = vld [vmem:[#allocation7 + $0x18] sm:$0xff] }
  0xa8   : > { %v976_v14 = vsel %vm975_vm12, 1, %v2740_v8  ;;  %v783_v24 = vor.u32 %v782_v11, %v781_v57  ;;  %v785_v25 = vshrl.u32 %v2739_v1, %v2963_v49  ;;  %v990_v26 = vshrl.u32 %v986_v46, 16 }
  0xa9   : > { %v978_v21 = vadd.s32 %v976_v14, %v974_v12  ;;  %v992_v27 = vshrl.u32 %v987_v55, 16  ;;  %v3011_v28 = vadd.s32 %v995_v10, %v991_v6  ;;  %v1000_v29 = vadd.s32 %v998_v23, %v996_v15 }
  0xaa   : > { %v786_v32 = vor.u32 %v785_v25, %v784_v20  ;;  %vm787_vm14 = vcmp.lt.s32.totalorder %v2959_v45, 1  ;;  %vm790_vm15 = vcmp.lt.s32.totalorder %v2959_v45, 4  ;;  %vm789_vm0 = vcmp.lt.s32.totalorder %v2959_v45, 3 }
  0xab   : > { %v979_v31 = vadd.s32 %v978_v21, %v968_v0  ;;  %v1001_v35 = vadd.s32 %v1000_v29, %v990_v26  ;;  %v795_v40 = vsel %vm787_vm14, %v2987_v34, %v2999_v7  ;;  %v796_v36 = vsel %vm790_vm15, %v783_v24, 920167782 }
  0xac   : > { %vm788_vm1 = vcmp.lt.s32.totalorder %v2959_v45, 2  ;;  %v797_v41 = vsel %vm789_vm0, %v780_v13, %v796_v36  ;;  %v799_v47 = vsel %vm787_vm14, %v2999_v7, %v780_v13  ;;  %v610_v51 = vadd.s32 1, %v2957_v44 }
  0xad   : > { %v3022_v37 = vadd.s32 %v979_v31, %v970_v3  ;;  %v1002_v53 = vadd.s32 %v1001_v35, %v992_v27  ;;  %v798_v46 = vsel %vm788_vm1, %v795_v40, %v797_v41  ;;  %v800_v55 = vsel %vm790_vm15, %v786_v32, 1326507024 }
  0xae   : > { %v1003_v57 = vmul.u32 %v2948_v39, %v2985_v33  ;;  %v801_v58 = vsel %vm789_vm0, %v783_v24, %v800_v55  ;;  %v3043_v60 = vshll.u32 %v763_v48, 8  ;;  %v828_v63 = vand.u32 65535, %v798_v46 }
  0xaf   : > { %vm1005_vm2 = vc.u32 %v3022_v37, %v3011_v28  ;;  %v1006_v44 = vadd.s32 1, %v1002_v53  ;;  %v802_v61 = vsel %vm788_vm1, %v799_v47, %v801_v58  ;;  %v829_v0 = vshrl.u32 %v798_v46, 16 }
  0xb0   : > { %v804_v3 = vand.u32 65535, %v3043_v60  ;;  %v805_v39 = vshrl.u32 %v3043_v60, 16  ;;  %v806_v33 = vand.u32 65535, %v802_v61  ;;  %v807_v4 = vshrl.u32 %v802_v61, 16 }
  0xb1   : > { %vm611_vm3 = vcmp.gt.s32.totalorder %v610_v51, 0  ;;  %v1007_v5 = vsel %vm1005_vm2, %v1006_v44, %v1002_v53  ;;  %v455_v48 = vadd.s32 1, %v2955_v43  ;;  %v3051_v10 = vmul.f32 %v2953_v42, %v439_v2 }
  0xb2   : > { %v1008_v6 = vadd.s32 %v1007_v5, %v1003_v57  ;;  %v809_v9 = vmul.u32 %v807_v4, %v804_v3  ;;  %v810_v38 = vmul.u32 %v806_v33, %v805_v39  ;;  %v831_v11 = vmul.u32 %v829_v0, %v804_v3 }
  0xb3   : > { %v832_v12 = vmul.u32 %v828_v63, %v805_v39  ;;  %v612_v54 = vsel %vm611_vm3, %v610_v51, 0  ;;  %v808_v15 = vmul.u32 %v806_v33, %v804_v3  ;;  %v792_v21 = vsel %vm790_vm15, %v780_v13, 2102212464 }
  0xb4   : > { %v1009_v14 = vadd.s32 536870912, %v1008_v6  ;;  %v812_v20 = vshll.u32 %v809_v9, 16  ;;  %v811_v23 = vmul.u32 %v807_v4, %v805_v39  ;;  %v830_v24 = vmul.u32 %v828_v63, %v804_v3 }
  0xb5   : > { %v834_v25 = vshll.u32 %v831_v11, 16  ;;  %v814_v27 = vshll.u32 %v810_v38, 16  ;;  %v836_v31 = vshll.u32 %v832_v12, 16  ;;  %v833_v36 = vmul.u32 %v829_v0, %v805_v39 }
  0xb6   : > { %v1010_v26 = vshrl.u32 %v1009_v14, 30  ;;  %vm816_vm4 = vc.u32 %v808_v15, %v812_v20  ;;  %v818_v29 = vadd.s32 %v812_v20, %v808_v15  ;;  %vm912_vm7 = vcmp.lt.s32.totalorder %v2930_v17, 0 }
  0xb7   : > { %v817_v43 = vsel %vm816_vm4, 1, %v2740_v8  ;;  %vm838_vm5 = vc.u32 %v830_v24, %v834_v25  ;;  %v840_v32 = vadd.s32 %v834_v25, %v830_v24  ;;  %v771_v13 = vshrl.u32 %v2734_v50, %v2963_v49 }
  0xb8   : > { %v1011_v35 = vshll.u32 %v1010_v26, 30  ;;  %v819_v40 = vadd.s32 %v817_v43, %v811_v23  ;;  %vm820_vm6 = vc.u32 %v818_v29, %v814_v27  ;;  %v839_v47 = vsel %vm838_vm5, 1, %v2740_v8 }
  0xb9   : > { %v821_v41 = vsel %vm820_vm6, 1, %v2740_v8  ;;  %vm842_vm8 = vc.u32 %v840_v32, %v836_v31  ;;  %v614_v51 = vand.u32 31, %v612_v54  ;;  %v841_v55 = vadd.s32 %v839_v47, %v833_v36 }
  0xba   : > { %v1012_v53 = vsub.s32 %v1008_v6, %v1011_v35  ;;  %v823_v46 = vadd.s32 %v821_v41, %v819_v40  ;;  %v791_v57 = vsel %vm787_vm14, %v771_v13, %v2987_v34  ;;  %v793_v58 = vsel %vm789_vm0, %v2999_v7, %v792_v21 }
  0xbb   : > { %v813_v44 = vshrl.u32 %v809_v9, 16  ;;  %v843_v49 = vsel %vm842_vm8, 1, %v2740_v8  ;;  %vm456_vm9 = vcmp.gt.s32.totalorder %v455_v48, 0  ;;  %v600_v63 = vand.u32 2147483647, %v2934_v19 }
  0xbc   : > { %vm1013_vm10 = vcmp.lt.s32.totalorder %v1012_v53, 0  ;;  %v1014_v61 = vsub.s32 0, %v1012_v53  ;;  %v815_v0 = vshrl.u32 %v810_v38, 16  ;;  %v835_v3 = vshrl.u32 %v831_v11, 16 }
  0xbd   : > { %v824_v2 = vadd.s32 %v823_v46, %v813_v44  ;;  %v845_v39 = vadd.s32 %v843_v49, %v841_v55  ;;  %v3069_v33 = vsub.s32 32, %v614_v51  ;;  %v1034_v34 = vsub.s32 4, %v1010_v26 }
  0xbe   : > { %v1015_v4 = vsel %vm1013_vm10, %v1014_v61, %v1012_v53  ;;  %v794_v5 = vsel %vm788_vm1, %v791_v57, %v793_v58  ;;  %v837_v9 = vshrl.u32 %v832_v12, 16  ;;  %v3076_v15 = vsel %vm456_vm9, %v455_v48, 0 }
  0xbf   : > { %v1016_v7 = vclz %v1015_v4  ;;  %v3073_v6 = vadd.s32 %v824_v2, %v815_v0  ;;  %v846_v14 = vadd.s32 %v845_v39, %v835_v3  ;;  %v3078_v20 = vshrl.u32 %v612_v54, 5 }
  0xc0   : > { %v1004_v38 = vadd.s32 %v3011_v28, %v3022_v37  ;;  %v3082_v11 = vadd.s32 %v840_v32, %v836_v31  ;;  %v848_v45 = vmul.u32 %v3043_v60, %v794_v5  ;;  %v607_v24 = vand.u32 8388607, %v600_v63 }
  0xc1   : > { %v2228_v21 = vadd.s32 4294967294, %v1016_v7  ;;  %v847_v23 = vadd.s32 %v846_v14, %v837_v9  ;;  %v1035_v12 = vsel %vm912_vm7, %v1034_v34, %v1010_v26  ;;  %v621_v48 = vshrl.u32 %v2736_v56, %v3069_v33  ;;  %v438_v7 = vld [vmem:[#allocation7 + $0x10] sm:$0xff] }
  0xc2   : > { %vm850_vm11 = vc.u32 %v3073_v6, %v3082_v11  ;;  %v624_v28 = vshrl.u32 %v2737_v59, %v3069_v33  ;;  %v618_v60 = vshrl.u32 %v2735_v52, %v3069_v33  ;;  %v627_v54 = vshrl.u32 %v2738_v62, %v3069_v33 }
  0xc3   : > { %vm2229_vm12 = vcmp.lt.s32.totalorder %v2228_v21, 0  ;;  %v851_v37 = vadd.s32 1, %v847_v23  ;;  %v620_v26 = vshll.u32 %v2735_v52, %v614_v51  ;;  %v623_v27 = vshll.u32 %v2736_v56, %v614_v51 }
  0xc4   : > { %v1019_v25 = vsel %vm2229_vm12, 0, %v2228_v21  ;;  %v630_v29 = vshrl.u32 %v2739_v1, %v3069_v33  ;;  %v626_v35 = vshll.u32 %v2737_v59, %v614_v51  ;;  %v629_v41 = vshll.u32 %v2738_v62, %v614_v51 }
  0xc5   : > { %v1020_v43 = vsub.s32 32, %v1019_v25  ;;  %v1024_v31 = vsub.s32 4294967266, %v1019_v25  ;;  %v852_v32 = vsel %vm850_vm11, %v851_v37, %v847_v23  ;;  %v3104_v36 = vor.u32 %v621_v48, %v620_v26 }
  0xc6   : > { %v853_v40 = vadd.s32 %v852_v32, %v848_v45  ;;  %v3106_v13 = vor.u32 %v624_v28, %v623_v27  ;;  %v1021_v47 = vshll.u32 %v1012_v53, %v1019_v25  ;;  %v628_v57 = vor.u32 %v627_v54, %v626_v35 }
  0xc7   : > { %v1022_v46 = vshrl.u32 %v1004_v38, %v1020_v43  ;;  %v1025_v55 = vadd.s32 127, %v1024_v31  ;;  %v608_v44 = vor.u32 8388608, %v607_v24  ;;  %v617_v49 = vshll.u32 %v2734_v50, %v614_v51 }
  0xc8   : > { %v854_v58 = vadd.s32 536870912, %v853_v40  ;;  %v631_v61 = vor.u32 %v630_v29, %v629_v41  ;;  %v3111_v0 = vand.u32 31, %v3076_v15  ;;  %vm3115_vm13 = vcmp.le.f32.partialorder %v910_v22, 0.7853982 }
  0xc9   : > { %v1023_v3 = vor.u32 %v1022_v46, %v1021_v47  ;;  %v1026_v39 = vshll.u32 %v1025_v55, 23  ;;  %v3121_v4 = vor.u32 %v618_v60, %v617_v49  ;;  %vm632_vm14 = vcmp.lt.s32.totalorder %v3078_v20, 1 }
  0xca   : > { %v3119_v53 = vshrl.u32 %v854_v58, 30  ;;  %vm635_vm15 = vcmp.lt.s32.totalorder %v3078_v20, 4  ;;  %v1037_v34 = vsel %vm3115_vm13, 0, %v1035_v12  ;;  %v644_v5 = vsel %vm632_vm14, %v3104_v36, %v3106_v13 }
  0xcb   : > { %v1027_v51 = vor.u32 4788187, %v1026_v39  ;;  %v641_v22 = vsel %vm635_vm15, %v628_v57, 920167782  ;;  %vm634_vm0 = vcmp.lt.s32.totalorder %v3078_v20, 3  ;;  %v3137_v38 = vshll.u32 %v608_v44, 8 }
  0xcc   : > { %v856_v9 = vshll.u32 %v3119_v53, 30  ;;  %v645_v14 = vsel %vm635_vm15, %v631_v61, 1326507024  ;;  %v1030_v23 = vcvt.s32.f32 %v1023_v3  ;;  %vm633_vm1 = vcmp.lt.s32.totalorder %v3078_v20, 2 }
  0xcd   : > { %v1028_v21 = vand.u32 2147483647, %v1027_v51  ;;  %v646_v45 = vsel %vm634_vm0, %v628_v57, %v645_v14  ;;  %v640_v12 = vsel %vm632_vm14, %v3121_v4, %v3104_v36  ;;  %v642_v48 = vsel %vm634_vm0, %v3106_v13, %v641_v22 }
  0xce   : > { %v3142_v24 = vsub.s32 %v853_v40, %v856_v9  ;;  %v647_v28 = vsel %vm633_vm1, %v644_v5, %v646_v45  ;;  %v1072_v60 = vsub.f32 0.0, %v3051_v10  ;;  %v3155_v54 = vmul.f32 %v2953_v42, %v438_v7 }
  0xcf   : > { %v1031_v37 = vmul.f32 %v1030_v23, %v1028_v21  ;;  %v651_v25 = vand.u32 65535, %v647_v28  ;;  %v1054_v26 = vadd.s32 3, %v1037_v34  ;;  %v3160_v29 = vshrl.u32 %v3137_v38, 16 }
  0xd0   : > { %vm858_vm2 = vcmp.lt.s32.totalorder %v3142_v24, 0  ;;  %v859_v27 = vsub.s32 0, %v3142_v24  ;;  %v3164_v31 = vsel %vm633_vm1, %v640_v12, %v642_v48  ;;  %v649_v32 = vand.u32 65535, %v3137_v38 }
  0xd1   : > { %v1032_v43 = vxor.u32 2147483648, %v1031_v37  ;;  %v652_v35 = vshrl.u32 %v647_v28, 16  ;;  %v3168_v40 = vsub.s32 32, %v3111_v0  ;;  %v616_v47 = vshrl.u32 %v2734_v50, %v3069_v33 }
  0xd2   : > { %v860_v41 = vsel %vm858_vm2, %v859_v27, %v3142_v24  ;;  %v3174_v46 = vmul.u32 %v651_v25, %v3160_v29  ;;  %v3178_v57 = vand.u32 3, %v1037_v34  ;;  %v3187_v61 = vand.u32 3, %v1054_v26 }
  0xd3   : > { %v1033_v55 = vsel %vm912_vm7, %v1032_v43, %v1031_v37  ;;  %v861_v58 = vclz %v860_v41  ;;  %v3180_v44 = vmul.u32 %v652_v35, %v649_v32  ;;  %v849_v33 = vadd.s32 %v3082_v11, %v3073_v6 }
  0xd4   : > { %v3185_v49 = vsel %vm3115_vm13, %v2930_v17, %v1033_v55  ;;  %v674_v3 = vshrl.u32 %v3164_v31, 16  ;;  %v653_v34 = vmul.u32 %v651_v25, %v649_v32  ;;  %v637_v2 = vsel %vm635_vm15, %v3106_v13, 2102212464 }
  0xd5   : > { %v1038_v39 = vmul.f32 %v3185_v49, %v3185_v49  ;;  %v2225_v51 = vadd.s32 4294967294, %v861_v58  ;;  %v657_v22 = vshll.u32 %v3180_v44, 16  ;;  %v656_v5 = vmul.u32 %v652_v35, %v3160_v29 }
  0xd6   : > { %v659_v7 = vshll.u32 %v3174_v46, 16  ;;  %v673_v9 = vand.u32 65535, %v3164_v31  ;;  %v3202_v45 = vmul.u32 %v674_v3, %v649_v32  ;;  %vm757_vm5 = vcmp.lt.s32.totalorder %v2928_v16, 0 }
  0xd7   : > { %v1039_v6 = vmul.f32 -0.001358992, %v1038_v39  ;;  %v1046_v11 = vmul.f32 -0.00019511016, %v1038_v39  ;;  %vm2226_vm3 = vcmp.lt.s32.totalorder %v2225_v51, 0  ;;  %vm661_vm4 = vc.u32 %v653_v34, %v657_v22 }
  0xd8   : > { %v864_v14 = vsel %vm2226_vm3, 0, %v2225_v51  ;;  %v662_v21 = vsel %vm661_vm4, 1, %v2740_v8  ;;  %v663_v23 = vadd.s32 %v657_v22, %v653_v34  ;;  %v636_v28 = vsel %vm632_vm14, %v616_v47, %v3121_v4 }
  0xd9   : > { %v1040_v12 = vadd.f32 0.041655596, %v1039_v6  ;;  %v1047_v48 = vadd.f32 0.008332121, %v1046_v11  ;;  %v865_v13 = vsub.s32 32, %v864_v14  ;;  %v869_v37 = vsub.s32 4294967266, %v864_v14 }
  0xda   : > { %v638_v25 = vsel %vm634_vm0, %v3104_v36, %v637_v2  ;;  %v664_v26 = vadd.s32 %v662_v21, %v656_v5  ;;  %vm665_vm6 = vc.u32 %v663_v23, %v659_v7  ;;  %vm3214_vm7 = vcmp.le.f32.partialorder %v755_v30, 0.7853982 }
  0xdb   : > { %v1041_v27 = vmul.f32 %v1040_v12, %v1038_v39  ;;  %v1048_v43 = vmul.f32 %v1047_v48, %v1038_v39  ;;  %v867_v31 = vshrl.u32 %v849_v33, %v865_v13  ;;  %v666_v35 = vsel %vm665_vm6, 1, %v2740_v8 }
  0xdc   : > { %v866_v4 = vshll.u32 %v3142_v24, %v864_v14  ;;  %v870_v47 = vadd.s32 127, %v869_v37  ;;  %v677_v55 = vmul.u32 %v673_v9, %v3160_v29  ;;  %v679_v36 = vshll.u32 %v3202_v45, 16 }
  0xdd   : > { %v1042_v58 = vadd.f32 -0.4999988, %v1041_v27  ;;  %v1049_v51 = vadd.f32 -0.16666654, %v1048_v43  ;;  %v668_v34 = vadd.s32 %v666_v35, %v664_v26  ;;  %v675_v22 = vmul.u32 %v673_v9, %v649_v32 }
  0xde   : > { %vm1057_vm8 = vcmp.eq.s32.totalorder %v3187_v61, 0  ;;  %vm1681_vm9 = vcmp.eq.s32.totalorder %v3178_v57, 0  ;;  %vm1684_vm10 = vcmp.eq.s32.totalorder %v3178_v57, 2  ;;  %v868_v30 = vor.u32 %v867_v31, %v866_v4 }
  0xdf   : > { %v871_v33 = vshll.u32 %v870_v47, 23  ;;  %v879_v2 = vsub.s32 4, %v3119_v53  ;;  %v658_v24 = vshrl.u32 %v3180_v44, 16  ;;  %v1043_v5 = vmul.f32 %v1042_v58, %v1038_v39 }
  0xe0   : > { %v1050_v7 = vmul.f32 %v1049_v51, %v1038_v39  ;;  %vm1056_vm11 = vcmp.lt.s32.totalorder %v3187_v61, 2  ;;  %vm1680_vm12 = vcmp.lt.s32.totalorder %v3178_v57, 2  ;;  %v678_v32 = vmul.u32 %v674_v3, %v3160_v29 }
  0xe1   : > { %vm683_vm13 = vc.u32 %v675_v22, %v679_v36  ;;  %vm1053_vm14 = vweird.f32 %v2930_v17  ;;  %v872_v9 = vor.u32 4788187, %v871_v33  ;;  %v681_v6 = vshll.u32 %v677_v55, 16 }
  0xe2   : > { %v684_v11 = vsel %vm683_vm13, 1, %v2740_v8  ;;  %v685_v14 = vadd.s32 %v679_v36, %v675_v22  ;;  %v1044_v21 = vadd.f32 1.0, %v1043_v5  ;;  %v1051_v23 = vadd.f32 1.0, %v1050_v7 }
  0xe3   : > { %v669_v12 = vadd.s32 %v668_v34, %v658_v24  ;;  %v686_v44 = vadd.s32 %v684_v11, %v678_v32  ;;  %v873_v48 = vand.u32 2147483647, %v872_v9  ;;  %v875_v39 = vcvt.s32.f32 %v868_v30 }
  0xe4   : > { %v880_v13 = vsel %vm757_vm5, %v879_v2, %v3119_v53  ;;  %vm687_vm15 = vc.u32 %v685_v14, %v681_v6  ;;  %v1052_v29 = vmul.f32 %v1051_v23, %v3185_v49  ;;  %v1061_v3 = vxor.u32 2147483648, %v1044_v21 }
  0xe5   : > { %v660_v37 = vshrl.u32 %v3174_v46, 16  ;;  %v688_v26 = vsel %vm687_vm15, 1, %v2740_v8  ;;  %vm1060_vm0 = vcmp.eq.s32.totalorder %v3187_v61, 2  ;;  %v876_v27 = vmul.f32 %v875_v39, %v873_v48 }
  0xe6   : > { %v680_v43 = vshrl.u32 %v3202_v45, 16  ;;  %v690_v31 = vadd.s32 %v688_v26, %v686_v44  ;;  %v1058_v35 = vxor.u32 2147483648, %v1052_v29  ;;  %v882_v4 = vsel %vm3214_vm7, 0, %v880_v13 }
  0xe7   : > { %v639_v53 = vsel %vm633_vm1, %v636_v28, %v638_v25  ;;  %v3243_v47 = vadd.s32 %v669_v12, %v660_v37  ;;  %v877_v49 = vxor.u32 2147483648, %v876_v27  ;;  %v682_v36 = vshrl.u32 %v677_v55, 16 }
  0xe8   : > { %v3245_v46 = vadd.s32 %v685_v14, %v681_v6  ;;  %v691_v58 = vadd.s32 %v690_v31, %v680_v43  ;;  %v1059_v51 = vsel %vm1057_vm8, %v1044_v21, %v1058_v35  ;;  %v1062_v34 = vsel %vm1060_vm0, %v1061_v3, %v1052_v29 }
  0xe9   : > { %v1683_v45 = vsel %vm1681_vm9, %v1044_v21, %v1058_v35  ;;  %v1686_v22 = vsel %vm1684_vm10, %v1061_v3, %v1052_v29  ;;  %v1063_v20 = vsel %vm1056_vm11, %v1059_v51, %v1062_v34  ;;  %v878_v25 = vsel %vm757_vm5, %v877_v49, %v876_v27 }
  0xea   : > { %v1687_v28 = vsel %vm1680_vm12, %v1683_v45, %v1686_v22  ;;  %v692_v55 = vadd.s32 %v691_v58, %v682_v36  ;;  %v1064_v30 = vsel %vm1053_vm14, nan, %v1063_v20  ;;  %v881_v2 = vsel %vm3214_vm7, %v2928_v16, %v878_v25 }
  0xeb   : > { %v1688_v33 = vsel %vm1053_vm14, nan, %v1687_v28  ;;  %vm695_vm1 = vc.u32 %v3243_v47, %v3245_v46  ;;  %v1068_v57 = vmul.f32 %v1064_v30, %v3051_v10  ;;  %v883_v24 = vmul.f32 %v881_v2, %v881_v2 }
  0xec   : > { %v1692_v61 = vmul.f32 %v1688_v33, %v1072_v60  ;;  %v696_v5 = vadd.s32 1, %v692_v55  ;;  %v693_v7 = vmul.u32 %v3137_v38, %v639_v53  ;;  %v3273_v41 = vshrl.u32 %v3076_v15, 5 }
  0xed   : > { %1726 = vmatpush.msra.mxu0 %v1068_v57  ;;  %v884_v17 = vmul.f32 -0.001358992, %v883_v24  ;;  %v891_v32 = vmul.f32 -0.00019511016, %v883_v24  ;;  %1800 = vmatpush.msra.mxu2 %v1068_v57  ;;  %v899_v6 = vadd.s32 3, %v882_v4  ;;  %v1071_v11 = vsub.f32 0.0, %v3155_v54 }
  0xee   : > { %1767 = vmatpush.msra.mxu1 %v1692_v61  ;;  %v697_v9 = vsel %vm695_vm1, %v696_v5, %v692_v55  ;;  %1829 = vmatpush.msra.mxu3 %v1692_v61  ;;  %v3276_v21 = vand.u32 3, %v882_v4  ;;  %v463_v38 = vshrl.u32 %v2735_v52, %v3168_v40  ;;  %v466_v12 = vshrl.u32 %v2736_v56, %v3168_v40 }
  0xef   : > { %v698_v14 = vadd.s32 %v697_v9, %v693_v7  ;;  %v885_v10 = vadd.f32 0.041655596, %v884_v17  ;;  %v892_v60 = vadd.f32 0.008332121, %v891_v32  ;;  %v471_v15 = vshll.u32 %v2737_v59, %v3111_v0 }
  0xf0   : > { %v472_v44 = vshrl.u32 %v2738_v62, %v3168_v40  ;;  %v445_v13 = vand.u32 2147483647, %v2932_v18  ;;  %v469_v29 = vshrl.u32 %v2737_v59, %v3168_v40  ;;  %v462_v37 = vshll.u32 %v2734_v50, %v3111_v0 }
  0xf1   : > { %v699_v23 = vadd.s32 536870912, %v698_v14  ;;  %v886_v48 = vmul.f32 %v885_v10, %v883_v24  ;;  %v893_v39 = vmul.f32 %v892_v60, %v883_v24  ;;  %v465_v26 = vshll.u32 %v2735_v52, %v3111_v0 }
  0xf2   : > { %v473_v27 = vor.u32 %v472_v44, %v471_v15  ;;  %v900_v35 = vand.u32 3, %v899_v6  ;;  %v468_v4 = vshll.u32 %v2736_v56, %v3111_v0  ;;  %vm1527_vm2 = vcmp.eq.s32.totalorder %v3276_v21, 0 }
  0xf3   : > { %v3289_v3 = vshrl.u32 %v699_v23, 30  ;;  %v887_v43 = vadd.f32 -0.4999988, %v886_v48  ;;  %v894_v31 = vadd.f32 -0.16666654, %v893_v39  ;;  %v3299_v59 = vor.u32 %v463_v38, %v462_v37 }
  0xf4   : > { %v3301_v49 = vor.u32 %v466_v12, %v465_v26  ;;  %v475_v36 = vshrl.u32 %v2739_v1, %v3168_v40  ;;  %vm1526_vm3 = vcmp.lt.s32.totalorder %v3276_v21, 2  ;;  %v3306_v51 = vor.u32 %v469_v29, %v468_v4 }
  0xf5   : > { %v701_v53 = vshll.u32 %v3289_v3, 30  ;;  %v888_v58 = vmul.f32 %v887_v43, %v883_v24  ;;  %v895_v52 = vmul.f32 %v894_v31, %v883_v24  ;;  %vm480_vm4 = vcmp.lt.s32.totalorder %v3273_v41, 4 }
  0xf6   : > { %vm898_vm5 = vweird.f32 %v2928_v16  ;;  %v452_v34 = vand.u32 8388607, %v445_v13  ;;  %v474_v45 = vshll.u32 %v2738_v62, %v3111_v0  ;;  %v486_v1 = vsel %vm480_vm4, %v473_v27, 920167782 }
  0xf7   : > { %v702_v56 = vsub.s32 %v698_v14, %v701_v53  ;;  %v889_v22 = vadd.f32 1.0, %v888_v58  ;;  %v896_v20 = vadd.f32 1.0, %v895_v52  ;;  %vm1530_vm6 = vcmp.eq.s32.totalorder %v3276_v21, 2 }
  0xf8   : > { %vm477_vm7 = vcmp.lt.s32.totalorder %v3273_v41, 1  ;;  %v476_v25 = vor.u32 %v475_v36, %v474_v45  ;;  %vm479_vm9 = vcmp.lt.s32.totalorder %v3273_v41, 3  ;;  %vm901_vm10 = vcmp.lt.s32.totalorder %v900_v35, 2 }
  0xf9   : > { %vm703_vm8 = vcmp.lt.s32.totalorder %v702_v56, 0  ;;  %v704_v28 = vsub.s32 0, %v702_v56  ;;  %v897_v55 = vmul.f32 %v896_v20, %v881_v2  ;;  %v906_v30 = vxor.u32 2147483648, %v889_v22 }
  0xfa   : > { %v485_v62 = vsel %vm477_vm7, %v3299_v59, %v3301_v49  ;;  %v487_v0 = vsel %vm479_vm9, %v3306_v51, %v486_v1  ;;  %vm902_vm11 = vcmp.eq.s32.totalorder %v900_v35, 0  ;;  %v453_v57 = vor.u32 8388608, %v452_v34 }
  0xfb   : > { %v705_v33 = vsel %vm703_vm8, %v704_v28, %v702_v56  ;;  %v903_v61 = vxor.u32 2147483648, %v897_v55  ;;  %vm905_vm12 = vcmp.eq.s32.totalorder %v900_v35, 2  ;;  %vm478_vm13 = vcmp.lt.s32.totalorder %v3273_v41, 2 }
  0xfc   : > { %v706_v24 = vclz %v705_v33  ;;  %v907_v2 = vsel %vm905_vm12, %v906_v30, %v897_v55  ;;  %v1532_v5 = vsel %vm1530_vm6, %v906_v30, %v897_v55  ;;  %v488_v7 = vsel %vm478_vm13, %v485_v62, %v487_v0 }
  0xfd   : > { %v489_v17 = vsel %vm477_vm7, %v3301_v49, %v3306_v51  ;;  %v904_v32 = vsel %vm902_vm11, %v889_v22, %v903_v61  ;;  %v1529_v9 = vsel %vm1527_vm2, %v889_v22, %v903_v61  ;;  %v490_v14 = vsel %vm480_vm4, %v476_v25, 1326507024 }
  0xfe   : > { %v2222_v6 = vadd.s32 4294967294, %v706_v24  ;;  %v908_v10 = vsel %vm901_vm10, %v904_v32, %v907_v2  ;;  %v1533_v60 = vsel %vm1526_vm3, %v1529_v9, %v1532_v5  ;;  %v491_v38 = vsel %vm479_vm9, %v473_v27, %v490_v14 }
  0xff   : > { %v3344_v23 = vshll.u32 %v453_v57, 8  ;;  %v909_v12 = vsel %vm898_vm5, nan, %v908_v10  ;;  %v1534_v15 = vsel %vm898_vm5, nan, %v1533_v60  ;;  %v492_v44 = vsel %vm478_vm13, %v489_v17, %v491_v38 }
 0x100   : > { %vm2223_vm14 = vcmp.lt.s32.totalorder %v2222_v6, 0  ;;  %v1067_v48 = vmul.f32 %v909_v12, %v3155_v54  ;;  %v1691_v21 = vmul.f32 %v1534_v15, %v1071_v11  ;;  %v694_v29 = vadd.s32 %v3245_v46, %v3243_v47 }
 0x101   : > { %v709_v39 = vsel %vm2223_vm14, 0, %v2222_v6  ;;  %v494_v27 = vand.u32 65535, %v3344_v23  ;;  %v495_v16 = vshrl.u32 %v3344_v23, 16  ;;  %v496_v43 = vand.u32 65535, %v492_v44 }
 0x102   : > { %v710_v37 = vsub.s32 32, %v709_v39  ;;  %v714_v26 = vsub.s32 4294967266, %v709_v39  ;;  %1727 = vmatpush.msra.mxu0 %v1067_v48  ;;  %1768 = vmatpush.msra.mxu1 %v1691_v21  ;;  %v497_v31 = vshrl.u32 %v492_v44, 16  ;;  %v519_v35 = vshrl.u32 %v488_v7, 16 }
 0x103   : > { %1801 = vmatpush.msra.mxu2 %v1067_v48  ;;  %1830 = vmatpush.msra.mxu3 %v1691_v21  ;;  %v711_v4 = vshll.u32 %v702_v56, %v709_v39  ;;  %v518_v53 = vand.u32 65535, %v488_v7  ;;  %v500_v58 = vmul.u32 %v496_v43, %v495_v16  ;;  %v498_v34 = vmul.u32 %v496_v43, %v494_v27 }
 0x104   : > { %v712_v54 = vshrl.u32 %v694_v29, %v710_v37  ;;  %v715_v11 = vadd.s32 127, %v714_v26  ;;  %v499_v36 = vmul.u32 %v497_v31, %v494_v27  ;;  %v521_v52 = vmul.u32 %v519_v35, %v494_v27 }
 0x105   : > { %v501_v45 = vmul.u32 %v497_v31, %v495_v16  ;;  %vm3361_vm15 = vcmp.le.f32.partialorder %v600_v63, 0.7853982  ;;  %v504_v28 = vshll.u32 %v500_v58, 16  ;;  %v520_v56 = vmul.u32 %v518_v53, %v494_v27 }
 0x106   : > { %v713_v47 = vor.u32 %v712_v54, %v711_v4  ;;  %v716_v46 = vshll.u32 %v715_v11, 23  ;;  %v502_v1 = vshll.u32 %v499_v36, 16  ;;  %v522_v25 = vmul.u32 %v518_v53, %v495_v16 }
 0x107   : > { %v524_v62 = vshll.u32 %v521_v52, 16  ;;  %v523_v57 = vmul.u32 %v519_v35, %v495_v16  ;;  %v482_v5 = vsel %vm480_vm4, %v3306_v51, 2102212464  ;;  %v503_v32 = vshrl.u32 %v499_v36, 16 }
 0x108   : > { %v717_v20 = vor.u32 4788187, %v716_v46  ;;  %v720_v55 = vcvt.s32.f32 %v713_v47  ;;  %vm506_vm0 = vc.u32 %v498_v34, %v502_v1  ;;  %v508_v30 = vadd.s32 %v502_v1, %v498_v34 }
 0x109   : > { %v507_v33 = vsel %vm506_vm0, 1, %v2740_v8  ;;  %v526_v61 = vshll.u32 %v522_v25, 16  ;;  %vm528_vm2 = vc.u32 %v520_v56, %v524_v62  ;;  %v530_v63 = vadd.s32 %v524_v62, %v520_v56 }
 0x10a   : > { %v718_v0 = vand.u32 2147483647, %v717_v20  ;;  %v509_v24 = vadd.s32 %v507_v33, %v501_v45  ;;  %vm510_vm1 = vc.u32 %v508_v30, %v504_v28  ;;  %v529_v17 = vsel %vm528_vm2, 1, %v2740_v8  ;;  %v437_v28 = vld [vmem:[#allocation7 + $0x8] sm:$0xff] }
 0x10b   : > { %v511_v7 = vsel %vm510_vm1, 1, %v2740_v8  ;;  %v531_v6 = vadd.s32 %v529_v17, %v523_v57  ;;  %vm532_vm3 = vc.u32 %v530_v63, %v526_v61  ;;  %vm602_vm5 = vcmp.lt.s32.totalorder %v2934_v19, 0 }
 0x10c   : > { %v721_v2 = vmul.f32 %v720_v55, %v718_v0  ;;  %v513_v9 = vadd.s32 %v511_v7, %v509_v24  ;;  %v461_v10 = vshrl.u32 %v2734_v50, %v3168_v40  ;;  %v533_v60 = vsel %vm532_vm3, 1, %v2740_v8 }
 0x10d   : > { %v505_v38 = vshrl.u32 %v500_v58, 16  ;;  %v525_v15 = vshrl.u32 %v521_v52, 16  ;;  %v535_v51 = vadd.s32 %v533_v60, %v531_v6  ;;  %v724_v48 = vsub.s32 4, %v3289_v3 }
 0x10e   : > { %v722_v14 = vxor.u32 2147483648, %v721_v2  ;;  %v514_v12 = vadd.s32 %v513_v9, %v503_v32  ;;  %v481_v21 = vsel %vm477_vm7, %v461_v10, %v3299_v59  ;;  %v483_v39 = vsel %vm479_vm9, %v3301_v49, %v482_v5 }
 0x10f   : > { %v527_v40 = vshrl.u32 %v522_v25, 16  ;;  %v536_v29 = vadd.s32 %v535_v51, %v525_v15  ;;  %v3389_v26 = vadd.s32 %v530_v63, %v526_v61  ;;  %v484_v27 = vsel %vm478_vm13, %v481_v21, %v483_v39 }
 0x110   : > { %v723_v44 = vsel %vm602_vm5, %v722_v14, %v721_v2  ;;  %v3387_v8 = vadd.s32 %v514_v12, %v505_v38  ;;  %v725_v59 = vsel %vm602_vm5, %v724_v48, %v3289_v3  ;;  %v538_v54 = vmul.u32 %v3344_v23, %v484_v27 }
 0x111   : > { %v726_v50 = vsel %vm3361_vm15, %v2934_v19, %v723_v44  ;;  %v537_v16 = vadd.s32 %v536_v29, %v527_v40  ;;  %v727_v11 = vsel %vm3361_vm15, 0, %v725_v59  ;;  %v442_v0 = vmul.f32 %v2953_v42, %v437_v28 }
 0x112   : > { %v728_v37 = vmul.f32 %v726_v50, %v726_v50  ;;  %vm540_vm4 = vc.u32 %v3387_v8, %v3389_v26  ;;  %v744_v3 = vadd.s32 3, %v727_v11  ;;  %v1371_v20 = vand.u32 3, %v727_v11 }
 0x113   : > { %v541_v31 = vadd.s32 1, %v537_v16  ;;  %vm743_vm6 = vweird.f32 %v2934_v19  ;;  %v1070_v7 = vsub.f32 0.0, %v442_v0  ;;  %v539_v15 = vadd.s32 %v3389_v26, %v3387_v8 }
 0x114   : > { %v729_v49 = vmul.f32 -0.001358992, %v728_v37  ;;  %v736_v43 = vmul.f32 -0.00019511016, %v728_v37  ;;  %v745_v55 = vand.u32 3, %v744_v3  ;;  %vm1372_vm7 = vcmp.lt.s32.totalorder %v1371_v20, 2 }
 0x115   : > { %v542_v41 = vsel %vm540_vm4, %v541_v31, %v537_v16  ;;  %vm1373_vm9 = vcmp.eq.s32.totalorder %v1371_v20, 0  ;;  %vm1376_vm13 = vcmp.eq.s32.totalorder %v1371_v20, 2  ;;  %vm447_vm15 = vcmp.lt.s32.totalorder %v2932_v18, 0 }
 0x116   : > { %v730_v35 = vadd.f32 0.041655596, %v729_v49  ;;  %v737_v4 = vadd.f32 0.008332121, %v736_v43  ;;  %v543_v58 = vadd.s32 %v542_v41, %v538_v54  ;;  %vm746_vm8 = vcmp.lt.s32.totalorder %v745_v55, 2 }
 0x117   : > { %vm747_vm11 = vcmp.eq.s32.totalorder %v745_v55, 0  ;;  %vm750_vm12 = vcmp.eq.s32.totalorder %v745_v55, 2  ;;  %vm446_vm0 = vcmp.le.f32.partialorder %v445_v13, 0.7853982 }
 0x118   : > { %v731_v53 = vmul.f32 %v730_v35, %v728_v37  ;;  %v738_v36 = vmul.f32 %v737_v4, %v728_v37  ;;  %v544_v52 = vadd.s32 536870912, %v543_v58 }
 0x11a   : > { %v732_v47 = vadd.f32 -0.4999988, %v731_v53  ;;  %v739_v46 = vadd.f32 -0.16666654, %v738_v36  ;;  %v545_v1 = vshrl.u32 %v544_v52, 30  ;;  %v436_v52 = vld [vmem:[#allocation7] sm:$0xff] }
 0x11c   : > { %v733_v34 = vmul.f32 %v732_v47, %v728_v37  ;;  %v740_v45 = vmul.f32 %v739_v46, %v728_v37  ;;  %v546_v23 = vshll.u32 %v545_v1, 30  ;;  %v569_v49 = vsub.s32 4, %v545_v1 }
 0x11e   : > { %v734_v56 = vadd.f32 1.0, %v733_v34  ;;  %v741_v25 = vadd.f32 1.0, %v740_v45  ;;  %v547_v62 = vsub.s32 %v543_v58, %v546_v23  ;;  %v570_v43 = vsel %vm447_vm15, %v569_v49, %v545_v1 }
 0x11f   : > { %v572_v11 = vsel %vm446_vm0, 0, %v570_v43  ;;  %v441_v1 = vmul.f32 %v2953_v42, %v436_v52 }
 0x120   : > { %v742_v30 = vmul.f32 %v741_v25, %v726_v50  ;;  %v751_v22 = vxor.u32 2147483648, %v734_v56  ;;  %vm548_vm10 = vcmp.lt.s32.totalorder %v547_v62, 0  ;;  %v549_v57 = vsub.s32 0, %v547_v62 }
 0x121   : > { %v589_v47 = vadd.s32 3, %v572_v11  ;;  %v1217_v20 = vand.u32 3, %v572_v11 }
 0x122   : > { %v748_v33 = vxor.u32 2147483648, %v742_v30  ;;  %v752_v24 = vsel %vm750_vm12, %v751_v22, %v742_v30  ;;  %v1378_v2 = vsel %vm1376_vm13, %v751_v22, %v742_v30  ;;  %v550_v32 = vsel %vm548_vm10, %v549_v57, %v547_v62 }
 0x123   : > { %v551_v14 = vclz %v550_v32  ;;  %v590_v45 = vand.u32 3, %v589_v47  ;;  %vm1218_vm2 = vcmp.lt.s32.totalorder %v1217_v20, 2  ;;  %vm1219_vm4 = vcmp.eq.s32.totalorder %v1217_v20, 0  ;;  %v1847_v32 = vld [vmem:[#allocation12 + $0x8] sm:$0xff] }
 0x124   : > { %v749_v61 = vsel %vm747_vm11, %v734_v56, %v748_v33  ;;  %v1375_v63 = vsel %vm1373_vm9, %v734_v56, %v748_v33 }
 0x125   : > { %v753_v5 = vsel %vm746_vm8, %v749_v61, %v752_v24  ;;  %v1379_v17 = vsel %vm1372_vm7, %v1375_v63, %v1378_v2  ;;  %v2219_v38 = vadd.s32 4294967294, %v551_v14  ;;  %vm591_vm1 = vcmp.lt.s32.totalorder %v590_v45, 2  ;;  %v1697_v63 = vld [vmem:[#allocation10] sm:$0xff]  ;;  %v1694_v14 = vld [vmem:[#allocation9 + $0x8] sm:$0xff] }
 0x126   : > { %v754_v9 = vsel %vm743_vm6, nan, %v753_v5  ;;  %v1380_v6 = vsel %vm743_vm6, nan, %v1379_v17  ;;  %vm592_vm3 = vcmp.eq.s32.totalorder %v590_v45, 0  ;;  %vm595_vm5 = vcmp.eq.s32.totalorder %v590_v45, 2  ;;  %v1693_v2 = vld [vmem:[#allocation9] sm:$0xff]  ;;  %v1849_v5 = vld [vmem:[#allocation12 + $0x18] sm:$0xff] }
 0x127   : > { %v1066_v10 = vmul.f32 %v754_v9, %v442_v0  ;;  %v1690_v60 = vmul.f32 %v1380_v6, %v1070_v7  ;;  %vm2220_vm14 = vcmp.lt.s32.totalorder %v2219_v38, 0  ;;  %vm1222_vm6 = vcmp.eq.s32.totalorder %v1217_v20, 2  ;;  %v1853_v7 = vld [vmem:[#allocation13 + $0x18] sm:$0xff]  ;;  %v1852_v17 = vld [vmem:[#allocation13 + $0x10] sm:$0xff]  ;;  %v1851_v9 = vld [vmem:[#allocation13 + $0x8] sm:$0xff] }
 0x128   : > { %v554_v12 = vsel %vm2220_vm14, 0, %v2219_v38  ;;  %vm588_vm7 = vweird.f32 %v2932_v18  ;;  %v1069_v0 = vsub.f32 0.0, %v441_v1  ;;  %vm1701_vm8 = vcmask 261120   ;;  %v1698_v6 = vld [vmem:[#allocation10 + $0x8] sm:$0xff]  ;;  %v1699_v38 = vld [vmem:[#allocation10 + $0x10] sm:$0xff] }
 0x129   : > { %1728 = vmatpush.msra.mxu0 %v1066_v10  ;;  %1769 = vmatpush.msra.mxu1 %v1690_v60  ;;  %v555_v51 = vsub.s32 32, %v554_v12  ;;  %v559_v44 = vsub.s32 4294967266, %v554_v12  ;;  %v556_v48 = vshll.u32 %v547_v62, %v554_v12  ;;  %v1695_v12 = vld [vmem:[#allocation9 + $0x10] sm:$0xff] }
 0x12a   : > { %1802 = vmatpush.msra.mxu2 %v1066_v10  ;;  %1831 = vmatpush.msra.mxu3 %v1690_v60  ;;  %v1846_v10 = vld [vmem:[#allocation12] sm:$0xff] }
 0x12b   : > { %v557_v21 = vshrl.u32 %v539_v15, %v555_v51  ;;  %v560_v39 = vadd.s32 127, %v559_v44  ;;  %v1850_v60 = vld [vmem:[#allocation13] sm:$0xff]  ;;  %v1700_v15 = vld [vmem:[#allocation10 + $0x18] sm:$0xff] }
 0x12c   : > { %v1696_v51 = vld [vmem:[#allocation9 + $0x18] sm:$0xff] }
 0x12d   : > { %v558_v19 = vor.u32 %v557_v21, %v556_v48  ;;  %v561_v50 = vshll.u32 %v560_v39, 23 }
 0x12f   : > { %v562_v40 = vor.u32 4788187, %v561_v50  ;;  %v565_v37 = vcvt.s32.f32 %v558_v19 }
 0x131   : > { %v563_v29 = vand.u32 2147483647, %v562_v40 }
 0x133   : > { %v566_v27 = vmul.f32 %v565_v37, %v563_v29 }
 0x135   : > { %v567_v16 = vxor.u32 2147483648, %v566_v27 }
 0x137   : > { %v568_v59 = vsel %vm447_vm15, %v567_v16, %v566_v27 }
 0x138   : > { %v571_v8 = vsel %vm446_vm0, %v2932_v18, %v568_v59  ;;  %v1848_v18 = vld [vmem:[#allocation12 + $0x10] sm:$0xff] }
 0x139   : > { %v573_v26 = vmul.f32 %v571_v8, %v571_v8 }
 0x13b   : > { %v574_v31 = vmul.f32 -0.001358992, %v573_v26  ;;  %v581_v35 = vmul.f32 -0.00019511016, %v573_v26 }
 0x13d   : > { %v575_v4 = vadd.f32 0.041655596, %v574_v31  ;;  %v582_v54 = vadd.f32 0.008332121, %v581_v35 }
 0x13f   : > { %v576_v41 = vmul.f32 %v575_v4, %v573_v26  ;;  %v583_v53 = vmul.f32 %v582_v54, %v573_v26 }
 0x141   : > { %v577_v36 = vadd.f32 -0.4999988, %v576_v41  ;;  %v584_v58 = vadd.f32 -0.16666654, %v583_v53 }
 0x143   : > { %v578_v46 = vmul.f32 %v577_v36, %v573_v26  ;;  %v585_v3 = vmul.f32 %v584_v58, %v573_v26 }
 0x145   : > { %v579_v13 = vadd.f32 1.0, %v578_v46  ;;  %v586_v34 = vadd.f32 1.0, %v585_v3 }
 0x147   : > { %v587_v28 = vmul.f32 %v586_v34, %v571_v8  ;;  %v596_v56 = vxor.u32 2147483648, %v579_v13 }
 0x149   : > { %v593_v25 = vxor.u32 2147483648, %v587_v28  ;;  %v597_v23 = vsel %vm595_vm5, %v596_v56, %v587_v28  ;;  %v1224_v22 = vsel %vm1222_vm6, %v596_v56, %v587_v28 }
 0x14b   : > { %v594_v55 = vsel %vm592_vm3, %v579_v13, %v593_v25  ;;  %v1221_v30 = vsel %vm1219_vm4, %v579_v13, %v593_v25 }
 0x14c   : > { %v598_v62 = vsel %vm591_vm1, %v594_v55, %v597_v23  ;;  %v1225_v33 = vsel %vm1218_vm2, %v1221_v30, %v1224_v22 }
 0x14d   : > { %v599_v57 = vsel %vm588_vm7, nan, %v598_v62  ;;  %v1226_v61 = vsel %vm588_vm7, nan, %v1225_v33 }
 0x14e   : > { %v1065_v24 = vmul.f32 %v599_v57, %v441_v1  ;;  %v1689_v42 = vmul.f32 %v1226_v61, %v1069_v0 }
 0x150   : > { %1729 = vmatpush.msra.mxu0 %v1065_v24  ;;  %1770 = vmatpush.msra.mxu1 %v1689_v42 }
 0x151   : > { %1803 = vmatpush.msra.mxu2 %v1065_v24  ;;  %1832 = vmatpush.msra.mxu3 %v1689_v42 }
 0x152   : > { %2250 = vmatmul.msk.f32.vlgmr.msra.gmra.mxu2 %vm1701_vm8, %v1697_v63  ;;  %2254 = vmatmul.msk.f32.vlgmr.msra.gmra.mxu3 %vm1701_vm8, %v1693_v2 }
 0x153   : > { %2242 = vmatmul.msk.f32.vlgmr.msra.gmra.mxu0 %vm1701_vm8, %v1693_v2  ;;  %2246 = vmatmul.msk.f32.vlgmr.msra.gmra.mxu1 %vm1701_vm8, %v1697_v63 }
 0x154   : > { %1956 = vmatpush.msrb.mxu2 %v1849_v5  ;;  %1985 = vmatpush.msrb.mxu3 %v1853_v7 }
 0x155   : > { %1878 = vmatpush.msrb.mxu0 %v1849_v5  ;;  %1919 = vmatpush.msrb.mxu1 %v1853_v7 }
 0x156   : > { %1957 = vmatpush.msrb.mxu2 %v1848_v18  ;;  %1986 = vmatpush.msrb.mxu3 %v1852_v17 }
 0x157   : > { %1879 = vmatpush.msrb.mxu0 %v1848_v18  ;;  %1920 = vmatpush.msrb.mxu1 %v1852_v17 }
 0x158   : > { %1958 = vmatpush.msrb.mxu2 %v1847_v32  ;;  %1987 = vmatpush.msrb.mxu3 %v1851_v9 }
 0x159   : > { %1880 = vmatpush.msrb.mxu0 %v1847_v32  ;;  %1921 = vmatpush.msrb.mxu1 %v1851_v9 }
 0x15a   : > { %2251 = vmatmul.msk.f32.gmra.mxu2 %vm1701_vm8, %v1698_v6  ;;  %2255 = vmatmul.msk.f32.gmra.mxu3 %vm1701_vm8, %v1694_v14 }
 0x15b   : > { %2243 = vmatmul.msk.f32.gmra.mxu0 %vm1701_vm8, %v1694_v14  ;;  %2247 = vmatmul.msk.f32.gmra.mxu1 %vm1701_vm8, %v1698_v6 }
 0x15c   : > { %1959 = vmatpush.msrb.mxu2 %v1846_v10  ;;  %1988 = vmatpush.msrb.mxu3 %v1850_v60 }
 0x15d   : > { %1881 = vmatpush.msrb.mxu0 %v1846_v10  ;;  %1922 = vmatpush.msrb.mxu1 %v1850_v60 }
 0x162   : > { %2252 = vmatmul.msk.f32.gmra.mxu2 %vm1701_vm8, %v1699_v38  ;;  %2256 = vmatmul.msk.f32.gmra.mxu3 %vm1701_vm8, %v1695_v12 }
 0x163   : > { %2244 = vmatmul.msk.f32.gmra.mxu0 %vm1701_vm8, %v1695_v12  ;;  %2248 = vmatmul.msk.f32.gmra.mxu1 %vm1701_vm8, %v1699_v38 }
 0x16a   : > { %2253 = vmatmul.msk.f32.gmra.mxu2 %vm1701_vm8, %v1700_v15  ;;  %2257 = vmatmul.msk.f32.gmra.mxu3 %vm1701_vm8, %v1696_v51 }
 0x16b   : > { %2245 = vmatmul.msk.f32.gmra.mxu0 %vm1701_vm8, %v1696_v51  ;;  %2249 = vmatmul.msk.f32.gmra.mxu1 %vm1701_vm8, %v1700_v15 }
 0x1d0   : > { %v1731_v44 = vpop.f32.mrf.mxu0  ;;  %v1772_v48 = vpop.f32.mrf.mxu1 }
 0x1d1   : > { %v1784_v21 = vsub.f32 %v1731_v44, %v1772_v48 }
 0x1d3   : > { %2258 = vmatmul.msk.f32.vlgmr.msrb.gmra.mxu0 %vm1701_vm8, %v1784_v21  ;;  %2270 = vmatmul.msk.f32.vlgmr.msrb.gmra.mxu3 %vm1701_vm8, %v1784_v21 }
 0x1d5   : > { %v1805_v39 = vpop.f32.mrf.mxu2  ;;  %v1834_v19 = vpop.f32.mrf.mxu3 }
 0x1d6   : > { %v1835_v50 = vadd.f32 %v1834_v19, %v1805_v39 }
 0x1d8   : > { %2262 = vmatmul.msk.f32.vlgmr.msrb.gmra.mxu1 %vm1701_vm8, %v1835_v50  ;;  %2266 = vmatmul.msk.f32.vlgmr.msrb.gmra.mxu2 %vm1701_vm8, %v1835_v50  ;;  %v1734_v40 = vpop.f32.mrf.mxu0  ;;  %v1775_v29 = vpop.f32.mrf.mxu1 }
 0x1d9   : > { %v1785_v37 = vsub.f32 %v1734_v40, %v1775_v29 }
 0x1db   : > { %2259 = vmatmul.msk.f32.gmra.mxu0 %vm1701_vm8, %v1785_v37  ;;  %2271 = vmatmul.msk.f32.gmra.mxu3 %vm1701_vm8, %v1785_v37 }
 0x1dd   : > { %v1808_v27 = vpop.f32.mrf.mxu2  ;;  %v1837_v16 = vpop.f32.mrf.mxu3 }
 0x1de   : > { %v1838_v59 = vadd.f32 %v1837_v16, %v1808_v27 }
 0x1e0   : > { %2263 = vmatmul.msk.f32.gmra.mxu1 %vm1701_vm8, %v1838_v59  ;;  %2267 = vmatmul.msk.f32.gmra.mxu2 %vm1701_vm8, %v1838_v59  ;;  %v1737_v49 = vpop.f32.mrf.mxu0  ;;  %v1778_v8 = vpop.f32.mrf.mxu1 }
 0x1e1   : > { %v1786_v26 = vsub.f32 %v1737_v49, %v1778_v8 }
 0x1e3   : > { %2260 = vmatmul.msk.f32.gmra.mxu0 %vm1701_vm8, %v1786_v26  ;;  %2272 = vmatmul.msk.f32.gmra.mxu3 %vm1701_vm8, %v1786_v26 }
 0x1e5   : > { %v1811_v43 = vpop.f32.mrf.mxu2  ;;  %v1840_v31 = vpop.f32.mrf.mxu3 }
 0x1e6   : > { %v1841_v35 = vadd.f32 %v1840_v31, %v1811_v43 }
 0x1e8   : > { %2264 = vmatmul.msk.f32.gmra.mxu1 %vm1701_vm8, %v1841_v35  ;;  %2268 = vmatmul.msk.f32.gmra.mxu2 %vm1701_vm8, %v1841_v35  ;;  %v1740_v4 = vpop.f32.mrf.mxu0  ;;  %v1781_v54 = vpop.f32.mrf.mxu1 }
 0x1e9   : > { %v1787_v11 = vsub.f32 %v1740_v4, %v1781_v54 }
 0x1eb   : > { %2261 = vmatmul.msk.f32.gmra.mxu0 %vm1701_vm8, %v1787_v11  ;;  %2273 = vmatmul.msk.f32.gmra.mxu3 %vm1701_vm8, %v1787_v11 }
 0x1ed   : > { %v1814_v41 = vpop.f32.mrf.mxu2  ;;  %v1843_v53 = vpop.f32.mrf.mxu3 }
 0x1ee   : > { %v1844_v36 = vadd.f32 %v1843_v53, %v1814_v41 }
 0x1f0   : > { %2265 = vmatmul.msk.f32.gmra.mxu1 %vm1701_vm8, %v1844_v36  ;;  %2269 = vmatmul.msk.f32.gmra.mxu2 %vm1701_vm8, %v1844_v36 }
 0x250   : > { %v1883_v58 = vpop.f32.mrf.mxu0 }
 0x255   : > { %v1924_v47 = vpop.f32.mrf.mxu1 }
 0x256   : > { %v1936_v46 = vsub.f32 %v1883_v58, %v1924_v47  ;;  %v1990_v3 = vpop.f32.mrf.mxu3 }
 0x258   : > { %1940 = vst.msk [vmem:[%s3451_s23] sm:$0xff] %vm1701_vm8, %v1936_v46  ;;  %v1886_v52 = vpop.f32.mrf.mxu0 }
 0x25b   : > { %v1961_v13 = vpop.f32.mrf.mxu2 }
 0x25c   : > { %v1991_v34 = vadd.f32 %v1990_v3, %v1961_v13 }
 0x25d   : > { %v1927_v45 = vpop.f32.mrf.mxu1 }
 0x25e   : > { %2002 = vst.msk [vmem:[%s3455_s18] sm:$0xff] %vm1701_vm8, %v1991_v34  ;;  %v1937_v20 = vsub.f32 %v1886_v52, %v1927_v45  ;;  %v1993_v28 = vpop.f32.mrf.mxu3 }
 0x260   : > { %1941 = vst.msk [vmem:[%s3451_s23 + $0x8] sm:$0xff] %vm1701_vm8, %v1937_v20  ;;  %v1889_v56 = vpop.f32.mrf.mxu0 }
 0x263   : > { %v1964_v1 = vpop.f32.mrf.mxu2 }
 0x264   : > { %v1994_v25 = vadd.f32 %v1993_v28, %v1964_v1 }
 0x265   : > { %v1930_v55 = vpop.f32.mrf.mxu1 }
 0x266   : > { %2003 = vst.msk [vmem:[%s3455_s18 + $0x8] sm:$0xff] %vm1701_vm8, %v1994_v25  ;;  %v1938_v23 = vsub.f32 %v1889_v56, %v1930_v55  ;;  %v1996_v30 = vpop.f32.mrf.mxu3 }
 0x268   : > { %1942 = vst.msk [vmem:[%s3451_s23 + $0x10] sm:$0xff] %vm1701_vm8, %v1938_v23  ;;  %v1892_v62 = vpop.f32.mrf.mxu0 }
 0x26b   : > { %v1967_v22 = vpop.f32.mrf.mxu2 }
 0x26c   : > { %v1997_v0 = vadd.f32 %v1996_v30, %v1967_v22 }
 0x26d   : > { %v1933_v33 = vpop.f32.mrf.mxu1 }
 0x26e   : > { %2004 = vst.msk [vmem:[%s3455_s18 + $0x10] sm:$0xff] %vm1701_vm8, %v1997_v0  ;;  %v1939_v57 = vsub.f32 %v1892_v62, %v1933_v33  ;;  %v1999_v61 = vpop.f32.mrf.mxu3 }
 0x270   : > { %1943 = vst.msk [vmem:[%s3451_s23 + $0x18] sm:$0xff] %vm1701_vm8, %v1939_v57 }
 0x271   : > { %2636 = shalt.err (!%p2633_p7)
}
 0x272   : > { %s2741_s23 = smov 128   ;;  %s2742_s4 = smov 8  }
 0x273   : > { %2314 = dma.vmem_to_hbm [thread:$0]  (%p2826_p5), %s3470_s19, 512, %s2027_s21, %s2007_s17, %s2741_s23, %s2741_s23, %s2742_s4   ;;  %v1970_v24 = vpop.f32.mrf.mxu2 }
 0x274   : > { %v2000_v42 = vadd.f32 %v1999_v61, %v1970_v24  ;;  %s2012_s13 = scalar_lea.sflag [#allocation17], %s3448_s10  ;;  %s2651_s24 = sshra.s32 %s2044_s0, 4  ;;  %s2652_s24 = int_to_ptr.hbm [resolvable:$true] %s2651_s24 }
 0x275   : > { %s2653_s12 = scalar_lea.hbm %s2652_s24, 32  ;;  %s2657_s22 = scalar_lea.hbm %s3530_s8, 128 }
 0x276   : > { %2005 = vst.msk [vmem:[%s3455_s18 + $0x18] sm:$0xff] %vm1701_vm8, %v2000_v42  ;;  %p2654_p8 = scmp.ne.s32.totalorder %s2652_s24, %s2653_s12  ;;  %p2658_p11 = scmp.lt.s32.totalorder %s2652_s24, %s3530_s8 }
 0x277   : > { %p2659_p12 = scmp.lt.s32.totalorder %s2657_s22, %s2653_s12 }
 0x278   : > { %p2655_p9 = pnand %p2654_p8, %p2826_p5 }
 0x279   : > { %p2660_p13 = por %p2659_p12, %p2658_p11 }
 0x27a   : > { %p2656_p10 = pneg %p2655_p9 }
 0x27c   : > { %p2661_p0 = pnand %p2660_p13, %p2656_p10 }
 0x27e   : > { %2664 = shalt.err (!%p2661_p0)
}
 0x27f   : > { %2315 = dma.vmem_to_hbm [thread:$0]  (%p2826_p5), %s2042_s2, 512, %s2044_s0, %s2012_s13, %s2741_s23, %s2741_s23, %s2742_s4  }
 0x280 PF: > { %p2361_p1 = scmp.ge.s32.totalorder %s2723_s30, 2  ;;  %s2058_s10 = sand.u32 1, %s2711_s27  }
 0x281   : > { %s2059_s18 = scalar_lea.sflag [#allocation4], %s2058_s10 }
 0x282   : > { %p2341_p2 = pnand %p2361_p1, %p2830_p6 }
 0x284   : > { %p2342_p3 = pneg %p2341_p2 }
 0x286   : > { %2702 = dma.done.wait (%p2342_p3), %s2059_s18, 512  }
 0x287   : > { %2704 = vsyncadd (%p2342_p3), %s2059_s18, 4294966784  ;;  %s2069_s21 = scalar_lea.sflag [#allocation17], %s2058_s10 }
 0x288   : > { %2706 = dma.done.wait (%p2342_p3), %s2069_s21, 512  }
 0x289   : > { %2708 = vsyncadd (%p2342_p3), %s2069_s21, 4294966784  ;;  %p27_p5 = scmp.ge.s32.totalorder %s2813_s11, 6   ;;  %s3547_s27 = smov %s2715_s28 }
 0x28a   : > { %s3548_s28 = smov %s2719_s29  ;;  %s3549_s29 = smov %s2824_s14 }
 0x28b   : > { %s3550_s30 = smov %s2813_s11  ;;  %29 = sbr.rel (!%p27_p5) target bundleno = 14 (0xe), region = 127 }
 0x290   :  { %2075 = vsyncpa [#allocation3], 1 }
 0x291   :  { %2077 = vsyncpa [#allocation3 + $0x1], 1 }
 0x292   :  { %2078 = vsyncpa [#allocation8], 1 }
 0x293   :  { %2079 = vsyncpa [#allocation11], 1 }
 0x294   :  { %2080 = vsyncpa [#allocation14], 1 }
 0x295   :  { %2081 = vsyncpa [#allocation4], 1 }
 0x296   :  { %2083 = vsyncpa [#allocation4 + $0x1], 1 }
 0x297   :  { %2084 = vsyncpa [#allocation17], 1 }
 0x298   :  { %2086 = vsyncpa [#allocation17 + $0x1], 1 }
 0x299   :  { %2087 = vsyncpa [#allocation5], 1 }
 0x29a   :  { %2089 = vsyncpa [#allocation5 + $0x1], 1 }

</bundles_post_ra>
